<compile_context>
chip_gen: v7x
topology: tpu7x:2x2x1
jax: 0.10.0
libtpu: 0.0.40
codegen_flags: <defaults>
</compile_context>

<pallas_src>
import math
import functools

import jax
import jax.numpy as jnp
from jax.experimental import pallas as pl
from jax.experimental.pallas import tpu as pltpu


# Default tile targets (v6e/v7x friendly 256/512 multiples; drop to 128 on v5e).
TM_DEFAULT = 256
TN_DEFAULT = 256
TK_DEFAULT = 512
TQ_DEFAULT = 128
TKV_DEFAULT = 256
TV_DEFAULT = 512

# Exact reciprocals match the torch reference closely; set True for the
# (faster, slightly approximate) EUP reciprocal at inference.
_APPROX_RECIPROCAL = False


def _recip(x):
    if _APPROX_RECIPROCAL:
        return pl.reciprocal(x, approx=True)
    return 1.0 / x


def _round_up(x, m):
    return ((x + m - 1) // m) * m


def _tile_and_pad(dim, target):
    """Return (tile, padded_dim): full dim if it fits in one tile, otherwise the
    target tile with the dim padded up to a tile multiple (never a silent
    full-extent fallback)."""
    if dim <= target:
        return dim, dim
    if dim % target == 0:
        return target, dim
    return target, _round_up(dim, target)


# -----------------------------------------------------------------------------
# Tiled matmul (+bias, optional relu, optional fused residual add)
# -----------------------------------------------------------------------------
def _matmul_kernel(*refs, activation, has_residual):
    if has_residual:
        x_ref, w_ref, b_ref, r_ref, o_ref, acc_ref = refs
    else:
        x_ref, w_ref, b_ref, o_ref, acc_ref = refs

    @pl.when(pl.program_id(2) == 0)
    def _():
        acc_ref[...] = jnp.zeros_like(acc_ref)

    acc_ref[...] += jnp.dot(x_ref[...], w_ref[...],
                            preferred_element_type=jnp.float32)

    @pl.when(pl.program_id(2) == pl.num_programs(2) - 1)
    def _():
        y = acc_ref[...] + b_ref[...].astype(jnp.float32)
        if activation == "relu":
            y = jnp.maximum(y, 0.0)
        if has_residual:
            y = y + r_ref[...].astype(jnp.float32)
        o_ref[...] = y.astype(o_ref.dtype)


def linear_pallas(x, w, b, residual=None, activation=None,
                  out_dtype=jnp.bfloat16,
                  tm=TM_DEFAULT, tn=TN_DEFAULT, tk=TK_DEFAULT):
    """y = act(x @ w + b) [+ residual].  x:(M,K) bf16, w:(K,N) bf16, b:(N,) f32."""
    M, K = x.shape
    N = w.shape[1]
    tm, Mp = _tile_and_pad(M, tm)
    tn, Np = _tile_and_pad(N, tn)
    tk, Kp = _tile_and_pad(K, tk)

    if Mp != M or Kp != K:
        x = jnp.pad(x, ((0, Mp - M), (0, Kp - K)))
    if Kp != K or Np != N:
        w = jnp.pad(w, ((0, Kp - K), (0, Np - N)))
    if Np != N:
        b = jnp.pad(b, (0, Np - N))
    has_residual = residual is not None
    if has_residual and (Mp != M or Np != N):
        residual = jnp.pad(residual, ((0, Mp - M), (0, Np - N)))

    in_specs = [
        pl.BlockSpec((tm, tk), lambda i, j, k: (i, k)),
        pl.BlockSpec((tk, tn), lambda i, j, k: (k, j)),
        pl.BlockSpec((1, tn), lambda i, j, k: (0, j)),
    ]
    args = [x, w, b.reshape(1, Np)]
    if has_residual:
        in_specs.append(pl.BlockSpec((tm, tn), lambda i, j, k: (i, j)))
        args.append(residual)

    out = pl.pallas_call(
        functools.partial(_matmul_kernel, activation=activation,
                          has_residual=has_residual),
        out_shape=jax.ShapeDtypeStruct((Mp, Np), out_dtype),
        grid=(Mp // tm, Np // tn, Kp // tk),
        in_specs=in_specs,
        out_specs=pl.BlockSpec((tm, tn), lambda i, j, k: (i, j)),
        scratch_shapes=[pltpu.VMEM((tm, tn), jnp.float32)],
        compiler_params=pltpu.CompilerParams(
            dimension_semantics=("parallel", "parallel", "arbitrary")),
    )(*args)

    if Mp != M or Np != N:
        out = out[:M, :N]
    return out


# -----------------------------------------------------------------------------
# LayerNorm (row-tiled; matches torch reference: unbiased std, (x-mu)/(std+eps))
# -----------------------------------------------------------------------------
def _layernorm_kernel(x_ref, a_ref, b_ref, o_ref, *, eps):
    x = x_ref[...].astype(jnp.float32)
    mean = jnp.mean(x, axis=-1, keepdims=True)
    diff = x - mean
    var = jnp.sum(diff * diff, axis=-1, keepdims=True) / (x.shape[-1] - 1)
    inv = _recip(jnp.sqrt(var) + eps)
    o_ref[...] = (a_ref[...] * diff * inv + b_ref[...]).astype(o_ref.dtype)


def layernorm_pallas(x, alpha, bias, eps=1e-6, tm=TM_DEFAULT):
    M, D = x.shape
    tm, Mp = _tile_and_pad(M, tm)
    if Mp != M:
        x = jnp.pad(x, ((0, Mp - M), (0, 0)))
    out = pl.pallas_call(
        functools.partial(_layernorm_kernel, eps=eps),
        out_shape=jax.ShapeDtypeStruct((Mp, D), jnp.bfloat16),
        grid=(Mp // tm,),
        in_specs=[
            pl.BlockSpec((tm, D), lambda i: (i, 0)),
            pl.BlockSpec((1, D), lambda i: (0, 0)),
            pl.BlockSpec((1, D), lambda i: (0, 0)),
        ],
        out_specs=pl.BlockSpec((tm, D), lambda i: (i, 0)),
        compiler_params=pltpu.CompilerParams(dimension_semantics=("parallel",)),
    )(x, alpha.reshape(1, D), bias.reshape(1, D))
    if Mp != M:
        out = out[:M]
    return out


# -----------------------------------------------------------------------------
# Flash-style attention: all heads of one batch per grid step, KV axis blocked
# -----------------------------------------------------------------------------
def _flash_attn_kernel(q_ref, k_ref, v_ref, bias_ref, o_ref,
                       m_sc, l_sc, acc_sc, *, scale):
    kv = pl.program_id(2)

    @pl.when(kv == 0)
    def _():
        m_sc[...] = jnp.full_like(m_sc, -jnp.inf)
        l_sc[...] = jnp.zeros_like(l_sc)
        acc_sc[...] = jnp.zeros_like(acc_sc)

    q = q_ref[0]                           # (H, tq, dh) bf16
    k = k_ref[0]                           # (H, tk, dh) bf16
    v = v_ref[0]                           # (H, tk, dh) bf16
    s = jnp.einsum("hqd,hkd->hqk", q, k,
                   preferred_element_type=jnp.float32) * scale
    # additive mask bias: 0 where valid, -1e9 where masked (per-batch, shared by heads)
    s = s + bias_ref[...].astype(jnp.float32)

    m_prev = m_sc[...]
    m_new = jnp.maximum(m_prev, jnp.max(s, axis=-1, keepdims=True))
    alpha = jnp.exp(m_prev - m_new)
    p = jnp.exp(s - m_new)
    l_sc[...] = alpha * l_sc[...] + jnp.sum(p, axis=-1, keepdims=True)
    acc_sc[...] = alpha * acc_sc[...] + jnp.einsum(
        "hqk,hkd->hqd", p.astype(v.dtype), v,
        preferred_element_type=jnp.float32)
    m_sc[...] = m_new

    @pl.when(kv == pl.num_programs(2) - 1)
    def _():
        o_ref[0] = (acc_sc[...] * _recip(l_sc[...])).astype(o_ref.dtype)


def attention_pallas(q, k, v, mask_bias, scale, tq=TQ_DEFAULT, tkv=TKV_DEFAULT):
    """q: (B,H,Sq,dh) bf16, k/v: (B,H,Sk,dh) bf16, mask_bias: (B,Sq,Sk) bf16."""
    B, H, Sq, dh = q.shape
    Sk = k.shape[2]
    tq, Sqp = _tile_and_pad(Sq, tq)
    tkv, Skp = _tile_and_pad(Sk, tkv)
    if Sqp != Sq:
        q = jnp.pad(q, ((0, 0), (0, 0), (0, Sqp - Sq), (0, 0)))
    if Skp != Sk:
        k = jnp.pad(k, ((0, 0), (0, 0), (0, Skp - Sk), (0, 0)))
        v = jnp.pad(v, ((0, 0), (0, 0), (0, Skp - Sk), (0, 0)))
    if Sqp != Sq or Skp != Sk:
        # padded KV positions are masked out; padded Q rows are sliced off below
        mask_bias = jnp.pad(mask_bias, ((0, 0), (0, Sqp - Sq), (0, Skp - Sk)),
                            constant_values=-1e9)

    out = pl.pallas_call(
        functools.partial(_flash_attn_kernel, scale=scale),
        out_shape=jax.ShapeDtypeStruct((B, H, Sqp, dh), jnp.bfloat16),
        grid=(B, Sqp // tq, Skp // tkv),
        in_specs=[
            pl.BlockSpec((1, H, tq, dh), lambda b, i, j: (b, 0, i, 0)),
            pl.BlockSpec((1, H, tkv, dh), lambda b, i, j: (b, 0, j, 0)),
            pl.BlockSpec((1, H, tkv, dh), lambda b, i, j: (b, 0, j, 0)),
            pl.BlockSpec((1, tq, tkv), lambda b, i, j: (b, i, j)),
        ],
        out_specs=pl.BlockSpec((1, H, tq, dh), lambda b, i, j: (b, 0, i, 0)),
        scratch_shapes=[
            pltpu.VMEM((H, tq, 1), jnp.float32),
            pltpu.VMEM((H, tq, 1), jnp.float32),
            pltpu.VMEM((H, tq, dh), jnp.float32),
        ],
        compiler_params=pltpu.CompilerParams(
            dimension_semantics=("parallel", "parallel", "arbitrary")),
    )(q, k, v, mask_bias)

    if Sqp != Sq:
        out = out[:, :, :Sq, :]
    return out


# -----------------------------------------------------------------------------
# Projection: fused vocab-tiled logits matmul + online logsumexp, then subtract
# -----------------------------------------------------------------------------
def _proj_lse_kernel(x_ref, w_ref, b_ref, z_ref, lse_ref, acc_ref, m_sc, s_sc):
    j = pl.program_id(1)
    k = pl.program_id(2)

    @pl.when(k == 0)
    def _():
        acc_ref[...] = jnp.zeros_like(acc_ref)

    @pl.when(jnp.logical_and(j == 0, k == 0))
    def _():
        m_sc[...] = jnp.full_like(m_sc, -jnp.inf)
        s_sc[...] = jnp.zeros_like(s_sc)

    acc_ref[...] += jnp.dot(x_ref[...], w_ref[...],
                            preferred_element_type=jnp.float32)

    @pl.when(k == pl.num_programs(2) - 1)
    def _():
        z = acc_ref[...] + b_ref[...].astype(jnp.float32)
        z_ref[...] = z
        m_prev = m_sc[...]
        m_new = jnp.maximum(m_prev, jnp.max(z, axis=-1, keepdims=True))
        s_sc[...] = s_sc[...] * jnp.exp(m_prev - m_new) + jnp.sum(
            jnp.exp(z - m_new), axis=-1, keepdims=True)
        m_sc[...] = m_new

    @pl.when(jnp.logical_and(j == pl.num_programs(1) - 1,
                             k == pl.num_programs(2) - 1))
    def _():
        lse_ref[...] = m_sc[...] + jnp.log(s_sc[...])


def _sub_lse_kernel(z_ref, lse_ref, o_ref):
    o_ref[...] = z_ref[...] - lse_ref[...]


def project_pallas(x, w, b, tm=TM_DEFAULT, tv=TV_DEFAULT, tk=TK_DEFAULT):
    """log_softmax(x @ w + b, axis=-1). x:(M,D) bf16, w:(D,V) bf16, b:(V,) f32."""
    M, D = x.shape
    V = w.shape[1]
    tm, Mp = _tile_and_pad(M, tm)
    tv, Vp = _tile_and_pad(V, tv)
    tk, Dp = _tile_and_pad(D, tk)

    if Mp != M or Dp != D:
        x = jnp.pad(x, ((0, Mp - M), (0, Dp - D)))
    if Dp != D or Vp != V:
        w = jnp.pad(w, ((0, Dp - D), (0, Vp - V)))
    if Vp != V:
        # padded vocab columns get a huge negative bias so they vanish in the lse
        b = jnp.pad(b, (0, Vp - V), constant_values=-1e30)

    logits, lse = pl.pallas_call(
        _proj_lse_kernel,
        out_shape=(jax.ShapeDtypeStruct((Mp, Vp), jnp.float32),
                   jax.ShapeDtypeStruct((Mp, 1), jnp.float32)),
        grid=(Mp // tm, Vp // tv, Dp // tk),
        in_specs=[
            pl.BlockSpec((tm, tk), lambda i, j, k: (i, k)),
            pl.BlockSpec((tk, tv), lambda i, j, k: (k, j)),
            pl.BlockSpec((1, tv), lambda i, j, k: (0, j)),
        ],
        out_specs=(pl.BlockSpec((tm, tv), lambda i, j, k: (i, j)),
                   pl.BlockSpec((tm, 1), lambda i, j, k: (i, 0))),
        scratch_shapes=[pltpu.VMEM((tm, tv), jnp.float32),
                        pltpu.VMEM((tm, 1), jnp.float32),
                        pltpu.VMEM((tm, 1), jnp.float32)],
        compiler_params=pltpu.CompilerParams(
            dimension_semantics=("parallel", "arbitrary", "arbitrary")),
    )(x, w, b.reshape(1, Vp))

    out = pl.pallas_call(
        _sub_lse_kernel,
        out_shape=jax.ShapeDtypeStruct((Mp, Vp), jnp.float32),
        grid=(Mp // tm, Vp // tv),
        in_specs=[pl.BlockSpec((tm, tv), lambda i, j: (i, j)),
                  pl.BlockSpec((tm, 1), lambda i, j: (i, 0))],
        out_specs=pl.BlockSpec((tm, tv), lambda i, j: (i, j)),
        compiler_params=pltpu.CompilerParams(
            dimension_semantics=("parallel", "parallel")),
    )(logits, lse)

    if Mp != M or Vp != V:
        out = out[:M, :V]
    return out


# -----------------------------------------------------------------------------
# Model glue (plain JAX under jit: embeddings, PE, head reshapes)
# -----------------------------------------------------------------------------
def make_positional_encoding(max_len, d_model):
    pos = jnp.arange(max_len, dtype=jnp.float32)[:, None]
    div = jnp.exp(jnp.arange(0, d_model, 2, dtype=jnp.float32)
                  * (-math.log(10000.0) / d_model))
    pe = jnp.zeros((max_len, d_model), jnp.float32)
    pe = pe.at[:, 0::2].set(jnp.sin(pos * div))
    pe = pe.at[:, 1::2].set(jnp.cos(pos * div))
    return pe


def init_params(key, src_vocab, tgt_vocab, d_model, n_layers, n_heads, d_ff, max_len):
    keys = iter(jax.random.split(key, 512))

    def lin(din, dout):
        lim = 1.0 / math.sqrt(din)
        return {"w": jax.random.uniform(next(keys), (din, dout), jnp.float32,
                                        -lim, lim).astype(jnp.bfloat16),
                "b": jax.random.uniform(next(keys), (dout,), jnp.float32, -lim, lim)}

    def fuse(parts):
        # fuse Q/K/V (or K/V) projections ONCE at init -- no per-forward concat
        return {"w": jnp.concatenate([p["w"] for p in parts], axis=1),
                "b": jnp.concatenate([p["b"] for p in parts], axis=0)}

    def norm():
        return {"alpha": jnp.ones((d_model,), jnp.float32),
                "bias": jnp.zeros((d_model,), jnp.float32)}

    def mha_self():
        wq, wk, wv, wo = [lin(d_model, d_model) for _ in range(4)]
        return {"wqkv": fuse([wq, wk, wv]), "wo": wo}

    def mha_cross():
        wq, wk, wv, wo = [lin(d_model, d_model) for _ in range(4)]
        return {"wq": wq, "wkv": fuse([wk, wv]), "wo": wo}

    def ff():
        return {"l1": lin(d_model, d_ff), "l2": lin(d_ff, d_model)}

    return {
        "src_embed": jax.random.normal(next(keys), (src_vocab, d_model), jnp.float32),
        "tgt_embed": jax.random.normal(next(keys), (tgt_vocab, d_model), jnp.float32),
        "pe": make_positional_encoding(max_len, d_model),
        "encoder": {
            "layers": [{"attn": mha_self(), "ff": ff(),
                        "norm1": norm(), "norm2": norm()}
                       for _ in range(n_layers)],
            "norm": norm(),
        },
        "decoder": {
            "layers": [{"self_attn": mha_self(), "cross_attn": mha_cross(),
                        "ff": ff(), "norm1": norm(), "norm2": norm(),
                        "norm3": norm()}
                       for _ in range(n_layers)],
            "norm": norm(),
        },
        "proj": lin(d_model, tgt_vocab),
    }


def _norm3(p, x, eps=1e-6):
    B, S, D = x.shape
    return layernorm_pallas(x.reshape(B * S, D), p["alpha"], p["bias"], eps).reshape(B, S, D)


def _mask_bias(mask, sq, sk):
    """(B,1,{1|Sq},Sk) 0/1 mask -> per-batch additive bias (B,Sq,Sk) bf16."""
    B = mask.shape[0]
    m = jnp.broadcast_to(mask.reshape(B, mask.shape[-2], mask.shape[-1]), (B, sq, sk))
    return jnp.where(m == 0, -1e9, 0.0).astype(jnp.bfloat16)


def _split_heads(x, B, S, n_heads, dh):
    # (B*S, H*dh) -> (B, H, S, dh)
    return x.reshape(B, S, n_heads, dh).transpose(0, 2, 1, 3)


def _merge_heads(x):
    # (B, H, S, dh) -> (B*S, H*dh)
    B, H, S, dh = x.shape
    return x.transpose(0, 2, 1, 3).reshape(B * S, H * dh)


def _mha_self(p, x_norm, residual, mask_bias, n_heads):
    """residual + Wo(attn(Wqkv(x_norm))) -- residual add fused into the Wo matmul."""
    B, S, D = x_norm.shape
    dh = D // n_heads
    qkv = linear_pallas(x_norm.reshape(B * S, D), p["wqkv"]["w"], p["wqkv"]["b"])
    qkv = qkv.reshape(B, S, 3, n_heads, dh).transpose(2, 0, 3, 1, 4)   # (3,B,H,S,dh)
    out = attention_pallas(qkv[0], qkv[1], qkv[2], mask_bias, 1.0 / math.sqrt(dh))
    y = linear_pallas(_merge_heads(out), p["wo"]["w"], p["wo"]["b"],
                      residual=residual.reshape(B * S, D))
    return y.reshape(B, S, D)


def _mha_cross(p, q_norm, kv_in, residual, mask_bias, n_heads):
    B, Sq, D = q_norm.shape
    Sk = kv_in.shape[1]
    dh = D // n_heads
    q = linear_pallas(q_norm.reshape(B * Sq, D), p["wq"]["w"], p["wq"]["b"])
    q = _split_heads(q, B, Sq, n_heads, dh)
    kv = linear_pallas(kv_in.reshape(B * Sk, D), p["wkv"]["w"], p["wkv"]["b"])
    kv = kv.reshape(B, Sk, 2, n_heads, dh).transpose(2, 0, 3, 1, 4)    # (2,B,H,Sk,dh)
    out = attention_pallas(q, kv[0], kv[1], mask_bias, 1.0 / math.sqrt(dh))
    y = linear_pallas(_merge_heads(out), p["wo"]["w"], p["wo"]["b"],
                      residual=residual.reshape(B * Sq, D))
    return y.reshape(B, Sq, D)


def _ff(p, x_norm, residual):
    """residual + L2(relu(L1(x_norm))) -- residual add fused into the L2 matmul."""
    B, S, D = x_norm.shape
    h = linear_pallas(x_norm.reshape(B * S, D), p["l1"]["w"], p["l1"]["b"],
                      activation="relu")
    y = linear_pallas(h, p["l2"]["w"], p["l2"]["b"],
                      residual=residual.reshape(B * S, D))
    return y.reshape(B, S, D)


def encode(params, src, src_mask, n_heads):
    d_model = params["pe"].shape[1]
    x = jnp.take(params["src_embed"], src, axis=0) * math.sqrt(d_model)
    x = (x + params["pe"][None, : x.shape[1], :]).astype(jnp.bfloat16)
    S = x.shape[1]
    bias = _mask_bias(src_mask, S, S)
    for lyr in params["encoder"]["layers"]:
        x = _mha_self(lyr["attn"], _norm3(lyr["norm1"], x), x, bias, n_heads)
        x = _ff(lyr["ff"], _norm3(lyr["norm2"], x), x)
    return _norm3(params["encoder"]["norm"], x)


def decode(params, enc_out, src_mask, target, target_mask, n_heads):
    d_model = params["pe"].shape[1]
    x = jnp.take(params["tgt_embed"], target, axis=0) * math.sqrt(d_model)
    x = (x + params["pe"][None, : x.shape[1], :]).astype(jnp.bfloat16)
    St = x.shape[1]
    Ss = enc_out.shape[1]
    self_bias = _mask_bias(target_mask, St, St)
    cross_bias = _mask_bias(src_mask, St, Ss)
    for lyr in params["decoder"]["layers"]:
        x = _mha_self(lyr["self_attn"], _norm3(lyr["norm1"], x), x, self_bias, n_heads)
        x = _mha_cross(lyr["cross_attn"], _norm3(lyr["norm2"], x), enc_out, x,
                       cross_bias, n_heads)
        x = _ff(lyr["ff"], _norm3(lyr["norm3"], x), x)
    return _norm3(params["decoder"]["norm"], x)


@functools.partial(jax.jit, static_argnames=("n_heads",))
def transformer_forward(params, src, target, src_mask, target_mask, n_heads):
    enc_out = encode(params, src, src_mask, n_heads)
    dec_out = decode(params, enc_out, src_mask, target, target_mask, n_heads)
    B, S, D = dec_out.shape
    logp = project_pallas(dec_out.reshape(B * S, D),
                          params["proj"]["w"], params["proj"]["b"])
    return logp.reshape(B, S, -1)


# -----------------------------------------------------------------------------
if __name__ == "__main__":
    B, S, D, H, DFF, NL, VOCAB = 2, 8, 32, 4, 64, 2, 16

    key = jax.random.PRNGKey(0)
    kp, ks, kt = jax.random.split(key, 3)
    params = init_params(kp, VOCAB, VOCAB, D, NL, H, DFF, max_len=64)

    src = jax.random.randint(ks, (B, S), 0, VOCAB)
    target = jax.random.randint(kt, (B, S), 0, VOCAB)
    src_mask = jnp.ones((B, 1, 1, S), jnp.int32)                       # padding mask (all valid)
    target_mask = jnp.tril(jnp.ones((S, S), jnp.int32))[None, None]    # causal mask
    target_mask = jnp.broadcast_to(target_mask, (B, 1, S, S))

    out = transformer_forward(params, src, target, src_mask, target_mask, n_heads=H)
    out = jax.block_until_ready(out)
    assert out.shape == (B, S, VOCAB)
    assert bool(jnp.all(jnp.isfinite(out)))
    print("KERNEL_OK")
</pallas_src>

<mosaic_0001>
module attributes {stable_mosaic.version = 11 : i64} {
  func.func @_matmul_kernel(%arg0: i32, %arg1: i32, %arg2: i32, %arg3: memref<16x32xbf16, #tpu.memory_space<vmem>>, %arg4: memref<32x96xbf16, #tpu.memory_space<vmem>>, %arg5: memref<1x96xf32, #tpu.memory_space<vmem>>, %arg6: memref<16x96xbf16, #tpu.memory_space<vmem>>, %arg7: memref<16x96xf32, #tpu.memory_space<vmem>>) attributes {dimension_semantics = [#tpu.dimension_semantics<parallel>, #tpu.dimension_semantics<parallel>, #tpu.dimension_semantics<arbitrary>], iteration_bounds = array<i64: 1, 1, 1>, scalar_prefetch = 0 : i64, scratch_operands = 1 : i64, tpu.core_type = #tpu.core_type<tc>, window_params = [{transform_indices = @transform_0, window_bounds = array<i64: 16, 32>}, {transform_indices = @transform_1, window_bounds = array<i64: 32, 96>}, {transform_indices = @transform_2, window_bounds = array<i64: 1, 96>}, {transform_indices = @transform_3, window_bounds = array<i64: 16, 96>}]} {
    %c0_i32 = arith.constant 0 : i32
    %0 = arith.cmpi eq, %arg2, %c0_i32 : i32
    %1 = arith.extui %0 : i1 to i32
    %c0_i32_0 = arith.constant 0 : i32
    %2 = arith.cmpi ne, %1, %c0_i32_0 : i32
    scf.if %2 {
      %cst_10 = arith.constant 0.000000e+00 : f32
      %12 = vector.broadcast %cst_10 : f32 to vector<16x96xf32>
      %c0_11 = arith.constant 0 : index
      %c0_12 = arith.constant 0 : index
      %13 = vector.load %arg7[%c0_11, %c0_12] : memref<16x96xf32, #tpu.memory_space<vmem>>, vector<16x96xf32>
      tpu.vector_store %arg7[%c0_11, %c0_12], %12 {strides = array<i32>} : memref<16x96xf32, #tpu.memory_space<vmem>>, vector<16x96xf32>,
    } else {
    }
    %c0 = arith.constant 0 : index
    %c0_1 = arith.constant 0 : index
    %3 = vector.load %arg7[%c0, %c0_1] : memref<16x96xf32, #tpu.memory_space<vmem>>, vector<16x96xf32>
    %c0_2 = arith.constant 0 : index
    %c0_3 = arith.constant 0 : index
    %4 = vector.load %arg3[%c0_2, %c0_3] : memref<16x32xbf16, #tpu.memory_space<vmem>>, vector<16x32xbf16>
    %c0_4 = arith.constant 0 : index
    %c0_5 = arith.constant 0 : index
    %5 = vector.load %arg4[%c0_4, %c0_5] : memref<32x96xbf16, #tpu.memory_space<vmem>>, vector<32x96xbf16>
    %cst = arith.constant dense<0.000000e+00> : vector<16x96xf32>
    %6 = tpu.matmul %4, %5, %cst {dimension_numbers = #tpu.dot_dimension_numbers<[1], [0], [0], [1], [0, 0, 1, 1], [], []>} : vector<16x32xbf16>, vector<32x96xbf16>, vector<16x96xf32> -> vector<16x96xf32>
    %7 = arith.addf %3, %6 : vector<16x96xf32>
    %c0_6 = arith.constant 0 : index
    %c0_7 = arith.constant 0 : index
    %8 = vector.load %arg7[%c0_6, %c0_7] : memref<16x96xf32, #tpu.memory_space<vmem>>, vector<16x96xf32>
    tpu.vector_store %arg7[%c0_6, %c0_7], %7 {strides = array<i32>} : memref<16x96xf32, #tpu.memory_space<vmem>>, vector<16x96xf32>,
    %c0_i32_8 = arith.constant 0 : i32
    %9 = arith.cmpi eq, %arg2, %c0_i32_8 : i32
    %10 = arith.extui %9 : i1 to i32
    %c0_i32_9 = arith.constant 0 : i32
    %11 = arith.cmpi ne, %10, %c0_i32_9 : i32
    scf.if %11 {
      %c0_10 = arith.constant 0 : index
      %c0_11 = arith.constant 0 : index
      %12 = vector.load %arg7[%c0_10, %c0_11] : memref<16x96xf32, #tpu.memory_space<vmem>>, vector<16x96xf32>
      %c0_12 = arith.constant 0 : index
      %c0_13 = arith.constant 0 : index
      %13 = vector.load %arg5[%c0_12, %c0_13] : memref<1x96xf32, #tpu.memory_space<vmem>>, vector<1x96xf32>
      %14 = vector.broadcast %13 : vector<1x96xf32> to vector<16x96xf32>
      %15 = arith.addf %12, %14 : vector<16x96xf32>
      %16 = arith.truncf %15 : vector<16x96xf32> to vector<16x96xbf16>
      %c0_14 = arith.constant 0 : index
      %c0_15 = arith.constant 0 : index
      %17 = vector.load %arg6[%c0_14, %c0_15] : memref<16x96xbf16, #tpu.memory_space<vmem>>, vector<16x96xbf16>
      tpu.vector_store %arg6[%c0_14, %c0_15], %16 {strides = array<i32>} : memref<16x96xbf16, #tpu.memory_space<vmem>>, vector<16x96xbf16>,
    } else {
    }
    return
  }
  func.func @transform_0(%arg0: i32, %arg1: i32, %arg2: i32) -> (i32, i32) {
    %c0_i32 = arith.constant 0 : i32
    return %arg0, %arg2 : i32, i32
  }
  func.func @transform_1(%arg0: i32, %arg1: i32, %arg2: i32) -> (i32, i32) {
    %c0_i32 = arith.constant 0 : i32
    return %arg2, %arg1 : i32, i32
  }
  func.func @transform_2(%arg0: i32, %arg1: i32, %arg2: i32) -> (i32, i32) {
    %c0_i32 = arith.constant 0 : i32
    %c0_i32_0 = arith.constant 0 : i32
    return %c0_i32, %arg1 : i32, i32
  }
  func.func @transform_3(%arg0: i32, %arg1: i32, %arg2: i32) -> (i32, i32) {
    %c0_i32 = arith.constant 0 : i32
    return %arg0, %arg1 : i32, i32
  }
}

module attributes {stable_mosaic.version = 11 : i64} {
  func.func @_layernorm_kernel(%arg0: i32, %arg1: memref<16x32xbf16, #tpu.memory_space<vmem>>, %arg2: memref<1x32xf32, #tpu.memory_space<vmem>>, %arg3: memref<1x32xf32, #tpu.memory_space<vmem>>, %arg4: memref<16x32xbf16, #tpu.memory_space<vmem>>) attributes {dimension_semantics = [#tpu.dimension_semantics<parallel>], iteration_bounds = array<i64: 1>, scalar_prefetch = 0 : i64, scratch_operands = 0 : i64, tpu.core_type = #tpu.core_type<tc>, window_params = [{transform_indices = @transform_0, window_bounds = array<i64: 16, 32>}, {pipeline_mode = #tpu.pipeline_mode<synchronous>, transform_indices = @transform_1, window_bounds = array<i64: 1, 32>}, {pipeline_mode = #tpu.pipeline_mode<synchronous>, transform_indices = @transform_2, window_bounds = array<i64: 1, 32>}, {transform_indices = @transform_3, window_bounds = array<i64: 16, 32>}]} {
    %c0 = arith.constant 0 : index
    %c0_0 = arith.constant 0 : index
    %0 = vector.load %arg1[%c0, %c0_0] : memref<16x32xbf16, #tpu.memory_space<vmem>>, vector<16x32xbf16>
    %1 = arith.extf %0 : vector<16x32xbf16> to vector<16x32xf32>
    %cst = arith.constant dense<0.000000e+00> : vector<16xf32>
    %2 = vector.multi_reduction <add>, %1, %cst [1] : vector<16x32xf32> to vector<16xf32>
    %3 = vector.shape_cast %2 : vector<16xf32> to vector<16x1xf32>
    %cst_1 = arith.constant 3.200000e+01 : f32
    %4 = vector.broadcast %cst_1 : f32 to vector<16x1xf32>
    %5 = arith.divf %3, %4 : vector<16x1xf32>
    %6 = vector.broadcast %5 : vector<16x1xf32> to vector<16x32xf32>
    %7 = arith.subf %1, %6 : vector<16x32xf32>
    %8 = arith.mulf %7, %7 : vector<16x32xf32>
    %cst_2 = arith.constant dense<0.000000e+00> : vector<16xf32>
    %9 = vector.multi_reduction <add>, %8, %cst_2 [1] : vector<16x32xf32> to vector<16xf32>
    %10 = vector.shape_cast %9 : vector<16xf32> to vector<16x1xf32>
    %cst_3 = arith.constant 3.100000e+01 : f32
    %11 = vector.broadcast %cst_3 : f32 to vector<16x1xf32>
    %12 = arith.divf %10, %11 : vector<16x1xf32>
    %13 = math.sqrt %12 : vector<16x1xf32>
    %cst_4 = arith.constant 9.99999997E-7 : f32
    %14 = vector.broadcast %cst_4 : f32 to vector<16x1xf32>
    %15 = arith.addf %13, %14 : vector<16x1xf32>
    %cst_5 = arith.constant 1.000000e+00 : f32
    %16 = vector.broadcast %cst_5 : f32 to vector<16x1xf32>
    %17 = arith.divf %16, %15 : vector<16x1xf32>
    %c0_6 = arith.constant 0 : index
    %c0_7 = arith.constant 0 : index
    %18 = vector.load %arg2[%c0_6, %c0_7] : memref<1x32xf32, #tpu.memory_space<vmem>>, vector<1x32xf32>
    %19 = vector.broadcast %18 : vector<1x32xf32> to vector<16x32xf32>
    %20 = arith.mulf %19, %7 : vector<16x32xf32>
    %21 = vector.broadcast %17 : vector<16x1xf32> to vector<16x32xf32>
    %22 = arith.mulf %20, %21 : vector<16x32xf32>
    %c0_8 = arith.constant 0 : index
    %c0_9 = arith.constant 0 : index
    %23 = vector.load %arg3[%c0_8, %c0_9] : memref<1x32xf32, #tpu.memory_space<vmem>>, vector<1x32xf32>
    %24 = vector.broadcast %23 : vector<1x32xf32> to vector<16x32xf32>
    %25 = arith.addf %22, %24 : vector<16x32xf32>
    %26 = arith.truncf %25 : vector<16x32xf32> to vector<16x32xbf16>
    %c0_10 = arith.constant 0 : index
    %c0_11 = arith.constant 0 : index
    %27 = vector.load %arg4[%c0_10, %c0_11] : memref<16x32xbf16, #tpu.memory_space<vmem>>, vector<16x32xbf16>
    tpu.vector_store %arg4[%c0_10, %c0_11], %26 {strides = array<i32>} : memref<16x32xbf16, #tpu.memory_space<vmem>>, vector<16x32xbf16>,
    return
  }
  func.func @transform_0(%arg0: i32) -> (i32, i32) {
    %c0_i32 = arith.constant 0 : i32
    %c0_i32_0 = arith.constant 0 : i32
    return %arg0, %c0_i32 : i32, i32
  }
  func.func @transform_1(%arg0: i32) -> (i32, i32) {
    %c0_i32 = arith.constant 0 : i32
    %c0_i32_0 = arith.constant 0 : i32
    %c0_i32_1 = arith.constant 0 : i32
    return %c0_i32, %c0_i32_0 : i32, i32
  }
  func.func @transform_2(%arg0: i32) -> (i32, i32) {
    %c0_i32 = arith.constant 0 : i32
    %c0_i32_0 = arith.constant 0 : i32
    %c0_i32_1 = arith.constant 0 : i32
    return %c0_i32, %c0_i32_0 : i32, i32
  }
  func.func @transform_3(%arg0: i32) -> (i32, i32) {
    %c0_i32 = arith.constant 0 : i32
    %c0_i32_0 = arith.constant 0 : i32
    return %arg0, %c0_i32 : i32, i32
  }
}

module attributes {stable_mosaic.version = 11 : i64} {
  func.func @_flash_attn_kernel(%arg0: i32, %arg1: i32, %arg2: i32, %arg3: memref<1x4x8x8xbf16, #tpu.memory_space<vmem>>, %arg4: memref<1x4x8x8xbf16, #tpu.memory_space<vmem>>, %arg5: memref<1x4x8x8xbf16, #tpu.memory_space<vmem>>, %arg6: memref<1x8x8xbf16, #tpu.memory_space<vmem>>, %arg7: memref<1x4x8x8xbf16, #tpu.memory_space<vmem>>, %arg8: memref<4x8x1xf32, #tpu.memory_space<vmem>>, %arg9: memref<4x8x1xf32, #tpu.memory_space<vmem>>, %arg10: memref<4x8x8xf32, #tpu.memory_space<vmem>>) attributes {dimension_semantics = [#tpu.dimension_semantics<parallel>, #tpu.dimension_semantics<parallel>, #tpu.dimension_semantics<arbitrary>], iteration_bounds = array<i64: 2, 1, 1>, scalar_prefetch = 0 : i64, scratch_operands = 3 : i64, tpu.core_type = #tpu.core_type<tc>, window_params = [{transform_indices = @transform_0, window_bounds = array<i64: 1, 4, 8, 8>}, {transform_indices = @transform_1, window_bounds = array<i64: 1, 4, 8, 8>}, {transform_indices = @transform_2, window_bounds = array<i64: 1, 4, 8, 8>}, {transform_indices = @transform_3, window_bounds = array<i64: 1, 8, 8>}, {transform_indices = @transform_4, window_bounds = array<i64: 1, 4, 8, 8>}]} {
    %c0_i32 = arith.constant 0 : i32
    %0 = arith.cmpi eq, %arg2, %c0_i32 : i32
    %1 = arith.extui %0 : i1 to i32
    %c0_i32_0 = arith.constant 0 : i32
    %2 = arith.cmpi ne, %1, %c0_i32_0 : i32
    scf.if %2 {
      %cst_39 = arith.constant 0xFF800000 : f32
      %42 = vector.broadcast %cst_39 : f32 to vector<4x8x1xf32>
      %c0_40 = arith.constant 0 : index
      %c0_41 = arith.constant 0 : index
      %c0_42 = arith.constant 0 : index
      %43 = vector.load %arg8[%c0_40, %c0_41, %c0_42] : memref<4x8x1xf32, #tpu.memory_space<vmem>>, vector<4x8x1xf32>
      tpu.vector_store %arg8[%c0_40, %c0_41, %c0_42], %42 {strides = array<i32>} : memref<4x8x1xf32, #tpu.memory_space<vmem>>, vector<4x8x1xf32>,
      %cst_43 = arith.constant 0.000000e+00 : f32
      %44 = vector.broadcast %cst_43 : f32 to vector<4x8x1xf32>
      %c0_44 = arith.constant 0 : index
      %c0_45 = arith.constant 0 : index
      %c0_46 = arith.constant 0 : index
      %45 = vector.load %arg9[%c0_44, %c0_45, %c0_46] : memref<4x8x1xf32, #tpu.memory_space<vmem>>, vector<4x8x1xf32>
      tpu.vector_store %arg9[%c0_44, %c0_45, %c0_46], %44 {strides = array<i32>} : memref<4x8x1xf32, #tpu.memory_space<vmem>>, vector<4x8x1xf32>,
      %cst_47 = arith.constant 0.000000e+00 : f32
      %46 = vector.broadcast %cst_47 : f32 to vector<4x8x8xf32>
      %c0_48 = arith.constant 0 : index
      %c0_49 = arith.constant 0 : index
      %c0_50 = arith.constant 0 : index
      %47 = vector.load %arg10[%c0_48, %c0_49, %c0_50] : memref<4x8x8xf32, #tpu.memory_space<vmem>>, vector<4x8x8xf32>
      tpu.vector_store %arg10[%c0_48, %c0_49, %c0_50], %46 {strides = array<i32>} : memref<4x8x8xf32, #tpu.memory_space<vmem>>, vector<4x8x8xf32>,
    } else {
    }
    %c0 = arith.constant 0 : index
    %c0_1 = arith.constant 0 : index
    %c0_2 = arith.constant 0 : index
    %c0_3 = arith.constant 0 : index
    %3 = vector.load %arg3[%c0, %c0_1, %c0_2, %c0_3] : memref<1x4x8x8xbf16, #tpu.memory_space<vmem>>, vector<1x4x8x8xbf16>
    %4 = vector.shape_cast %3 : vector<1x4x8x8xbf16> to vector<4x8x8xbf16>
    %c0_4 = arith.constant 0 : index
    %c0_5 = arith.constant 0 : index
    %c0_6 = arith.constant 0 : index
    %c0_7 = arith.constant 0 : index
    %5 = vector.load %arg4[%c0_4, %c0_5, %c0_6, %c0_7] : memref<1x4x8x8xbf16, #tpu.memory_space<vmem>>, vector<1x4x8x8xbf16>
    %6 = vector.shape_cast %5 : vector<1x4x8x8xbf16> to vector<4x8x8xbf16>
    %c0_8 = arith.constant 0 : index
    %c0_9 = arith.constant 0 : index
    %c0_10 = arith.constant 0 : index
    %c0_11 = arith.constant 0 : index
    %7 = vector.load %arg5[%c0_8, %c0_9, %c0_10, %c0_11] : memref<1x4x8x8xbf16, #tpu.memory_space<vmem>>, vector<1x4x8x8xbf16>
    %8 = vector.shape_cast %7 : vector<1x4x8x8xbf16> to vector<4x8x8xbf16>
    "tpu.trace_start"() <{level = 10 : i32, message = "hqd,hkd->hqk"}> : () -> ()
    %cst = arith.constant dense<0.000000e+00> : vector<4x8x8xf32>
    %9 = tpu.matmul %4, %6, %cst {dimension_numbers = #tpu.dot_dimension_numbers<[2], [2], [1], [1], [0, 0, 0, 1, 1, 1], [0], [0]>} : vector<4x8x8xbf16>, vector<4x8x8xbf16>, vector<4x8x8xf32> -> vector<4x8x8xf32>
    "tpu.trace_stop"() : () -> ()
    %cst_12 = arith.constant 0.353553385 : f32
    %10 = vector.broadcast %cst_12 : f32 to vector<4x8x8xf32>
    %11 = arith.mulf %9, %10 : vector<4x8x8xf32>
    %c0_13 = arith.constant 0 : index
    %c0_14 = arith.constant 0 : index
    %c0_15 = arith.constant 0 : index
    %12 = vector.load %arg6[%c0_13, %c0_14, %c0_15] : memref<1x8x8xbf16, #tpu.memory_space<vmem>>, vector<1x8x8xbf16>
    %13 = arith.extf %12 : vector<1x8x8xbf16> to vector<1x8x8xf32>
    %14 = vector.broadcast %13 : vector<1x8x8xf32> to vector<4x8x8xf32>
    %15 = arith.addf %11, %14 : vector<4x8x8xf32>
    %c0_16 = arith.constant 0 : index
    %c0_17 = arith.constant 0 : index
    %c0_18 = arith.constant 0 : index
    %16 = vector.load %arg8[%c0_16, %c0_17, %c0_18] : memref<4x8x1xf32, #tpu.memory_space<vmem>>, vector<4x8x1xf32>
    %cst_19 = arith.constant dense<0xFF800000> : vector<4x8xf32>
    %17 = vector.multi_reduction <maximumf>, %15, %cst_19 [2] : vector<4x8x8xf32> to vector<4x8xf32>
    %18 = vector.shape_cast %17 : vector<4x8xf32> to vector<4x8x1xf32>
    %19 = arith.maximumf %16, %18 : vector<4x8x1xf32>
    %20 = arith.subf %16, %19 : vector<4x8x1xf32>
    %21 = math.exp %20 : vector<4x8x1xf32>
    %22 = vector.broadcast %19 : vector<4x8x1xf32> to vector<4x8x8xf32>
    %23 = arith.subf %15, %22 : vector<4x8x8xf32>
    %24 = math.exp %23 : vector<4x8x8xf32>
    %c0_20 = arith.constant 0 : index
    %c0_21 = arith.constant 0 : index
    %c0_22 = arith.constant 0 : index
    %25 = vector.load %arg9[%c0_20, %c0_21, %c0_22] : memref<4x8x1xf32, #tpu.memory_space<vmem>>, vector<4x8x1xf32>
    %26 = arith.mulf %21, %25 : vector<4x8x1xf32>
    %cst_23 = arith.constant dense<0.000000e+00> : vector<4x8xf32>
    %27 = vector.multi_reduction <add>, %24, %cst_23 [2] : vector<4x8x8xf32> to vector<4x8xf32>
    %28 = vector.shape_cast %27 : vector<4x8xf32> to vector<4x8x1xf32>
    %29 = arith.addf %26, %28 : vector<4x8x1xf32>
    %c0_24 = arith.constant 0 : index
    %c0_25 = arith.constant 0 : index
    %c0_26 = arith.constant 0 : index
    %30 = vector.load %arg9[%c0_24, %c0_25, %c0_26] : memref<4x8x1xf32, #tpu.memory_space<vmem>>, vector<4x8x1xf32>
    tpu.vector_store %arg9[%c0_24, %c0_25, %c0_26], %29 {strides = array<i32>} : memref<4x8x1xf32, #tpu.memory_space<vmem>>, vector<4x8x1xf32>,
    %c0_27 = arith.constant 0 : index
    %c0_28 = arith.constant 0 : index
    %c0_29 = arith.constant 0 : index
    %31 = vector.load %arg10[%c0_27, %c0_28, %c0_29] : memref<4x8x8xf32, #tpu.memory_space<vmem>>, vector<4x8x8xf32>
    %32 = vector.broadcast %21 : vector<4x8x1xf32> to vector<4x8x8xf32>
    %33 = arith.mulf %32, %31 : vector<4x8x8xf32>
    %34 = arith.truncf %24 : vector<4x8x8xf32> to vector<4x8x8xbf16>
    "tpu.trace_start"() <{level = 10 : i32, message = "hqk,hkd->hqd"}> : () -> ()
    %cst_30 = arith.constant dense<0.000000e+00> : vector<4x8x8xf32>
    %35 = tpu.matmul %34, %8, %cst_30 {dimension_numbers = #tpu.dot_dimension_numbers<[2], [1], [1], [2], [0, 0, 0, 1, 1, 2], [0], [0]>} : vector<4x8x8xbf16>, vector<4x8x8xbf16>, vector<4x8x8xf32> -> vector<4x8x8xf32>
    "tpu.trace_stop"() : () -> ()
    %36 = arith.addf %33, %35 : vector<4x8x8xf32>
    %c0_31 = arith.constant 0 : index
    %c0_32 = arith.constant 0 : index
    %c0_33 = arith.constant 0 : index
    %37 = vector.load %arg10[%c0_31, %c0_32, %c0_33] : memref<4x8x8xf32, #tpu.memory_space<vmem>>, vector<4x8x8xf32>
    tpu.vector_store %arg10[%c0_31, %c0_32, %c0_33], %36 {strides = array<i32>} : memref<4x8x8xf32, #tpu.memory_space<vmem>>, vector<4x8x8xf32>,
    %c0_34 = arith.constant 0 : index
    %c0_35 = arith.constant 0 : index
    %c0_36 = arith.constant 0 : index
    %38 = vector.load %arg8[%c0_34, %c0_35, %c0_36] : memref<4x8x1xf32, #tpu.memory_space<vmem>>, vector<4x8x1xf32>
    tpu.vector_store %arg8[%c0_34, %c0_35, %c0_36], %19 {strides = array<i32>} : memref<4x8x1xf32, #tpu.memory_space<vmem>>, vector<4x8x1xf32>,
    %c0_i32_37 = arith.constant 0 : i32
    %39 = arith.cmpi eq, %arg2, %c0_i32_37 : i32
    %40 = arith.extui %39 : i1 to i32
    %c0_i32_38 = arith.constant 0 : i32
    %41 = arith.cmpi ne, %40, %c0_i32_38 : i32
    scf.if %41 {
      %c0_39 = arith.constant 0 : index
      %c0_40 = arith.constant 0 : index
      %c0_41 = arith.constant 0 : index
      %42 = vector.load %arg10[%c0_39, %c0_40, %c0_41] : memref<4x8x8xf32, #tpu.memory_space<vmem>>, vector<4x8x8xf32>
      %c0_42 = arith.constant 0 : index
      %c0_43 = arith.constant 0 : index
      %c0_44 = arith.constant 0 : index
      %43 = vector.load %arg9[%c0_42, %c0_43, %c0_44] : memref<4x8x1xf32, #tpu.memory_space<vmem>>, vector<4x8x1xf32>
      %cst_45 = arith.constant 1.000000e+00 : f32
      %44 = vector.broadcast %cst_45 : f32 to vector<4x8x1xf32>
      %45 = arith.divf %44, %43 : vector<4x8x1xf32>
      %46 = vector.broadcast %45 : vector<4x8x1xf32> to vector<4x8x8xf32>
      %47 = arith.mulf %42, %46 : vector<4x8x8xf32>
      %48 = arith.truncf %47 : vector<4x8x8xf32> to vector<4x8x8xbf16>
      %c0_46 = arith.constant 0 : index
      %c0_47 = arith.constant 0 : index
      %c0_48 = arith.constant 0 : index
      %c0_49 = arith.constant 0 : index
      %49 = vector.load %arg7[%c0_46, %c0_47, %c0_48, %c0_49] : memref<1x4x8x8xbf16, #tpu.memory_space<vmem>>, vector<1x4x8x8xbf16>
      %50 = vector.shape_cast %49 : vector<1x4x8x8xbf16> to vector<4x8x8xbf16>
      %51 = vector.shape_cast %48 : vector<4x8x8xbf16> to vector<1x4x8x8xbf16>
      tpu.vector_store %arg7[%c0_46, %c0_47, %c0_48, %c0_49], %51 {strides = array<i32>} : memref<1x4x8x8xbf16, #tpu.memory_space<vmem>>, vector<1x4x8x8xbf16>,
    } else {
    }
    return
  }
  func.func @transform_0(%arg0: i32, %arg1: i32, %arg2: i32) -> (i32, i32, i32, i32) {
    %c0_i32 = arith.constant 0 : i32
    %c0_i32_0 = arith.constant 0 : i32
    %c0_i32_1 = arith.constant 0 : i32
    return %arg0, %c0_i32, %arg1, %c0_i32_0 : i32, i32, i32, i32
  }
  func.func @transform_1(%arg0: i32, %arg1: i32, %arg2: i32) -> (i32, i32, i32, i32) {
    %c0_i32 = arith.constant 0 : i32
    %c0_i32_0 = arith.constant 0 : i32
    %c0_i32_1 = arith.constant 0 : i32
    return %arg0, %c0_i32, %arg2, %c0_i32_0 : i32, i32, i32, i32
  }
  func.func @transform_2(%arg0: i32, %arg1: i32, %arg2: i32) -> (i32, i32, i32, i32) {
    %c0_i32 = arith.constant 0 : i32
    %c0_i32_0 = arith.constant 0 : i32
    %c0_i32_1 = arith.constant 0 : i32
    return %arg0, %c0_i32, %arg2, %c0_i32_0 : i32, i32, i32, i32
  }
  func.func @transform_3(%arg0: i32, %arg1: i32, %arg2: i32) -> (i32, i32, i32) {
    %c0_i32 = arith.constant 0 : i32
    return %arg0, %arg1, %arg2 : i32, i32, i32
  }
  func.func @transform_4(%arg0: i32, %arg1: i32, %arg2: i32) -> (i32, i32, i32, i32) {
    %c0_i32 = arith.constant 0 : i32
    %c0_i32_0 = arith.constant 0 : i32
    %c0_i32_1 = arith.constant 0 : i32
    return %arg0, %c0_i32, %arg1, %c0_i32_0 : i32, i32, i32, i32
  }
}

module attributes {stable_mosaic.version = 11 : i64} {
  func.func @_matmul_kernel(%arg0: i32, %arg1: i32, %arg2: i32, %arg3: memref<16x32xbf16, #tpu.memory_space<vmem>>, %arg4: memref<32x32xbf16, #tpu.memory_space<vmem>>, %arg5: memref<1x32xf32, #tpu.memory_space<vmem>>, %arg6: memref<16x32xbf16, #tpu.memory_space<vmem>>, %arg7: memref<16x32xbf16, #tpu.memory_space<vmem>>, %arg8: memref<16x32xf32, #tpu.memory_space<vmem>>) attributes {dimension_semantics = [#tpu.dimension_semantics<parallel>, #tpu.dimension_semantics<parallel>, #tpu.dimension_semantics<arbitrary>], iteration_bounds = array<i64: 1, 1, 1>, scalar_prefetch = 0 : i64, scratch_operands = 1 : i64, tpu.core_type = #tpu.core_type<tc>, window_params = [{transform_indices = @transform_0, window_bounds = array<i64: 16, 32>}, {transform_indices = @transform_1, window_bounds = array<i64: 32, 32>}, {transform_indices = @transform_2, window_bounds = array<i64: 1, 32>}, {transform_indices = @transform_3, window_bounds = array<i64: 16, 32>}, {transform_indices = @transform_4, window_bounds = array<i64: 16, 32>}]} {
    %c0_i32 = arith.constant 0 : i32
    %0 = arith.cmpi eq, %arg2, %c0_i32 : i32
    %1 = arith.extui %0 : i1 to i32
    %c0_i32_0 = arith.constant 0 : i32
    %2 = arith.cmpi ne, %1, %c0_i32_0 : i32
    scf.if %2 {
      %cst_10 = arith.constant 0.000000e+00 : f32
      %12 = vector.broadcast %cst_10 : f32 to vector<16x32xf32>
      %c0_11 = arith.constant 0 : index
      %c0_12 = arith.constant 0 : index
      %13 = vector.load %arg8[%c0_11, %c0_12] : memref<16x32xf32, #tpu.memory_space<vmem>>, vector<16x32xf32>
      tpu.vector_store %arg8[%c0_11, %c0_12], %12 {strides = array<i32>} : memref<16x32xf32, #tpu.memory_space<vmem>>, vector<16x32xf32>,
    } else {
    }
    %c0 = arith.constant 0 : index
    %c0_1 = arith.constant 0 : index
    %3 = vector.load %arg8[%c0, %c0_1] : memref<16x32xf32, #tpu.memory_space<vmem>>, vector<16x32xf32>
    %c0_2 = arith.constant 0 : index
    %c0_3 = arith.constant 0 : index
    %4 = vector.load %arg3[%c0_2, %c0_3] : memref<16x32xbf16, #tpu.memory_space<vmem>>, vector<16x32xbf16>
    %c0_4 = arith.constant 0 : index
    %c0_5 = arith.constant 0 : index
    %5 = vector.load %arg4[%c0_4, %c0_5] : memref<32x32xbf16, #tpu.memory_space<vmem>>, vector<32x32xbf16>
    %cst = arith.constant dense<0.000000e+00> : vector<16x32xf32>
    %6 = tpu.matmul %4, %5, %cst {dimension_numbers = #tpu.dot_dimension_numbers<[1], [0], [0], [1], [0, 0, 1, 1], [], []>} : vector<16x32xbf16>, vector<32x32xbf16>, vector<16x32xf32> -> vector<16x32xf32>
    %7 = arith.addf %3, %6 : vector<16x32xf32>
    %c0_6 = arith.constant 0 : index
    %c0_7 = arith.constant 0 : index
    %8 = vector.load %arg8[%c0_6, %c0_7] : memref<16x32xf32, #tpu.memory_space<vmem>>, vector<16x32xf32>
    tpu.vector_store %arg8[%c0_6, %c0_7], %7 {strides = array<i32>} : memref<16x32xf32, #tpu.memory_space<vmem>>, vector<16x32xf32>,
    %c0_i32_8 = arith.constant 0 : i32
    %9 = arith.cmpi eq, %arg2, %c0_i32_8 : i32
    %10 = arith.extui %9 : i1 to i32
    %c0_i32_9 = arith.constant 0 : i32
    %11 = arith.cmpi ne, %10, %c0_i32_9 : i32
    scf.if %11 {
      %c0_10 = arith.constant 0 : index
      %c0_11 = arith.constant 0 : index
      %12 = vector.load %arg8[%c0_10, %c0_11] : memref<16x32xf32, #tpu.memory_space<vmem>>, vector<16x32xf32>
      %c0_12 = arith.constant 0 : index
      %c0_13 = arith.constant 0 : index
      %13 = vector.load %arg5[%c0_12, %c0_13] : memref<1x32xf32, #tpu.memory_space<vmem>>, vector<1x32xf32>
      %14 = vector.broadcast %13 : vector<1x32xf32> to vector<16x32xf32>
      %15 = arith.addf %12, %14 : vector<16x32xf32>
      %c0_14 = arith.constant 0 : index
      %c0_15 = arith.constant 0 : index
      %16 = vector.load %arg6[%c0_14, %c0_15] : memref<16x32xbf16, #tpu.memory_space<vmem>>, vector<16x32xbf16>
      %17 = arith.extf %16 : vector<16x32xbf16> to vector<16x32xf32>
      %18 = arith.addf %15, %17 : vector<16x32xf32>
      %19 = arith.truncf %18 : vector<16x32xf32> to vector<16x32xbf16>
      %c0_16 = arith.constant 0 : index
      %c0_17 = arith.constant 0 : index
      %20 = vector.load %arg7[%c0_16, %c0_17] : memref<16x32xbf16, #tpu.memory_space<vmem>>, vector<16x32xbf16>
      tpu.vector_store %arg7[%c0_16, %c0_17], %19 {strides = array<i32>} : memref<16x32xbf16, #tpu.memory_space<vmem>>, vector<16x32xbf16>,
    } else {
    }
    return
  }
  func.func @transform_0(%arg0: i32, %arg1: i32, %arg2: i32) -> (i32, i32) {
    %c0_i32 = arith.constant 0 : i32
    return %arg0, %arg2 : i32, i32
  }
  func.func @transform_1(%arg0: i32, %arg1: i32, %arg2: i32) -> (i32, i32) {
    %c0_i32 = arith.constant 0 : i32
    return %arg2, %arg1 : i32, i32
  }
  func.func @transform_2(%arg0: i32, %arg1: i32, %arg2: i32) -> (i32, i32) {
    %c0_i32 = arith.constant 0 : i32
    %c0_i32_0 = arith.constant 0 : i32
    return %c0_i32, %arg1 : i32, i32
  }
  func.func @transform_3(%arg0: i32, %arg1: i32, %arg2: i32) -> (i32, i32) {
    %c0_i32 = arith.constant 0 : i32
    return %arg0, %arg1 : i32, i32
  }
  func.func @transform_4(%arg0: i32, %arg1: i32, %arg2: i32) -> (i32, i32) {
    %c0_i32 = arith.constant 0 : i32
    return %arg0, %arg1 : i32, i32
  }
}

module attributes {stable_mosaic.version = 11 : i64} {
  func.func @_matmul_kernel(%arg0: i32, %arg1: i32, %arg2: i32, %arg3: memref<16x32xbf16, #tpu.memory_space<vmem>>, %arg4: memref<32x32xbf16, #tpu.memory_space<vmem>>, %arg5: memref<1x32xf32, #tpu.memory_space<vmem>>, %arg6: memref<16x32xbf16, #tpu.memory_space<vmem>>, %arg7: memref<16x32xf32, #tpu.memory_space<vmem>>) attributes {dimension_semantics = [#tpu.dimension_semantics<parallel>, #tpu.dimension_semantics<parallel>, #tpu.dimension_semantics<arbitrary>], iteration_bounds = array<i64: 1, 1, 1>, scalar_prefetch = 0 : i64, scratch_operands = 1 : i64, tpu.core_type = #tpu.core_type<tc>, window_params = [{transform_indices = @transform_0, window_bounds = array<i64: 16, 32>}, {transform_indices = @transform_1, window_bounds = array<i64: 32, 32>}, {transform_indices = @transform_2, window_bounds = array<i64: 1, 32>}, {transform_indices = @transform_3, window_bounds = array<i64: 16, 32>}]} {
    %c0_i32 = arith.constant 0 : i32
    %0 = arith.cmpi eq, %arg2, %c0_i32 : i32
    %1 = arith.extui %0 : i1 to i32
    %c0_i32_0 = arith.constant 0 : i32
    %2 = arith.cmpi ne, %1, %c0_i32_0 : i32
    scf.if %2 {
      %cst_10 = arith.constant 0.000000e+00 : f32
      %12 = vector.broadcast %cst_10 : f32 to vector<16x32xf32>
      %c0_11 = arith.constant 0 : index
      %c0_12 = arith.constant 0 : index
      %13 = vector.load %arg7[%c0_11, %c0_12] : memref<16x32xf32, #tpu.memory_space<vmem>>, vector<16x32xf32>
      tpu.vector_store %arg7[%c0_11, %c0_12], %12 {strides = array<i32>} : memref<16x32xf32, #tpu.memory_space<vmem>>, vector<16x32xf32>,
    } else {
    }
    %c0 = arith.constant 0 : index
    %c0_1 = arith.constant 0 : index
    %3 = vector.load %arg7[%c0, %c0_1] : memref<16x32xf32, #tpu.memory_space<vmem>>, vector<16x32xf32>
    %c0_2 = arith.constant 0 : index
    %c0_3 = arith.constant 0 : index
    %4 = vector.load %arg3[%c0_2, %c0_3] : memref<16x32xbf16, #tpu.memory_space<vmem>>, vector<16x32xbf16>
    %c0_4 = arith.constant 0 : index
    %c0_5 = arith.constant 0 : index
    %5 = vector.load %arg4[%c0_4, %c0_5] : memref<32x32xbf16, #tpu.memory_space<vmem>>, vector<32x32xbf16>
    %cst = arith.constant dense<0.000000e+00> : vector<16x32xf32>
    %6 = tpu.matmul %4, %5, %cst {dimension_numbers = #tpu.dot_dimension_numbers<[1], [0], [0], [1], [0, 0, 1, 1], [], []>} : vector<16x32xbf16>, vector<32x32xbf16>, vector<16x32xf32> -> vector<16x32xf32>
    %7 = arith.addf %3, %6 : vector<16x32xf32>
    %c0_6 = arith.constant 0 : index
    %c0_7 = arith.constant 0 : index
    %8 = vector.load %arg7[%c0_6, %c0_7] : memref<16x32xf32, #tpu.memory_space<vmem>>, vector<16x32xf32>
    tpu.vector_store %arg7[%c0_6, %c0_7], %7 {strides = array<i32>} : memref<16x32xf32, #tpu.memory_space<vmem>>, vector<16x32xf32>,
    %c0_i32_8 = arith.constant 0 : i32
    %9 = arith.cmpi eq, %arg2, %c0_i32_8 : i32
    %10 = arith.extui %9 : i1 to i32
    %c0_i32_9 = arith.constant 0 : i32
    %11 = arith.cmpi ne, %10, %c0_i32_9 : i32
    scf.if %11 {
      %c0_10 = arith.constant 0 : index
      %c0_11 = arith.constant 0 : index
      %12 = vector.load %arg7[%c0_10, %c0_11] : memref<16x32xf32, #tpu.memory_space<vmem>>, vector<16x32xf32>
      %c0_12 = arith.constant 0 : index
      %c0_13 = arith.constant 0 : index
      %13 = vector.load %arg5[%c0_12, %c0_13] : memref<1x32xf32, #tpu.memory_space<vmem>>, vector<1x32xf32>
      %14 = vector.broadcast %13 : vector<1x32xf32> to vector<16x32xf32>
      %15 = arith.addf %12, %14 : vector<16x32xf32>
      %16 = arith.truncf %15 : vector<16x32xf32> to vector<16x32xbf16>
      %c0_14 = arith.constant 0 : index
      %c0_15 = arith.constant 0 : index
      %17 = vector.load %arg6[%c0_14, %c0_15] : memref<16x32xbf16, #tpu.memory_space<vmem>>, vector<16x32xbf16>
      tpu.vector_store %arg6[%c0_14, %c0_15], %16 {strides = array<i32>} : memref<16x32xbf16, #tpu.memory_space<vmem>>, vector<16x32xbf16>,
    } else {
    }
    return
  }
  func.func @transform_0(%arg0: i32, %arg1: i32, %arg2: i32) -> (i32, i32) {
    %c0_i32 = arith.constant 0 : i32
    return %arg0, %arg2 : i32, i32
  }
  func.func @transform_1(%arg0: i32, %arg1: i32, %arg2: i32) -> (i32, i32) {
    %c0_i32 = arith.constant 0 : i32
    return %arg2, %arg1 : i32, i32
  }
  func.func @transform_2(%arg0: i32, %arg1: i32, %arg2: i32) -> (i32, i32) {
    %c0_i32 = arith.constant 0 : i32
    %c0_i32_0 = arith.constant 0 : i32
    return %c0_i32, %arg1 : i32, i32
  }
  func.func @transform_3(%arg0: i32, %arg1: i32, %arg2: i32) -> (i32, i32) {
    %c0_i32 = arith.constant 0 : i32
    return %arg0, %arg1 : i32, i32
  }
}

module attributes {stable_mosaic.version = 11 : i64} {
  func.func @_matmul_kernel(%arg0: i32, %arg1: i32, %arg2: i32, %arg3: memref<16x32xbf16, #tpu.memory_space<vmem>>, %arg4: memref<32x64xbf16, #tpu.memory_space<vmem>>, %arg5: memref<1x64xf32, #tpu.memory_space<vmem>>, %arg6: memref<16x64xbf16, #tpu.memory_space<vmem>>, %arg7: memref<16x64xf32, #tpu.memory_space<vmem>>) attributes {dimension_semantics = [#tpu.dimension_semantics<parallel>, #tpu.dimension_semantics<parallel>, #tpu.dimension_semantics<arbitrary>], iteration_bounds = array<i64: 1, 1, 1>, scalar_prefetch = 0 : i64, scratch_operands = 1 : i64, tpu.core_type = #tpu.core_type<tc>, window_params = [{transform_indices = @transform_0, window_bounds = array<i64: 16, 32>}, {transform_indices = @transform_1, window_bounds = array<i64: 32, 64>}, {transform_indices = @transform_2, window_bounds = array<i64: 1, 64>}, {transform_indices = @transform_3, window_bounds = array<i64: 16, 64>}]} {
    %c0_i32 = arith.constant 0 : i32
    %0 = arith.cmpi eq, %arg2, %c0_i32 : i32
    %1 = arith.extui %0 : i1 to i32
    %c0_i32_0 = arith.constant 0 : i32
    %2 = arith.cmpi ne, %1, %c0_i32_0 : i32
    scf.if %2 {
      %cst_10 = arith.constant 0.000000e+00 : f32
      %12 = vector.broadcast %cst_10 : f32 to vector<16x64xf32>
      %c0_11 = arith.constant 0 : index
      %c0_12 = arith.constant 0 : index
      %13 = vector.load %arg7[%c0_11, %c0_12] : memref<16x64xf32, #tpu.memory_space<vmem>>, vector<16x64xf32>
      tpu.vector_store %arg7[%c0_11, %c0_12], %12 {strides = array<i32>} : memref<16x64xf32, #tpu.memory_space<vmem>>, vector<16x64xf32>,
    } else {
    }
    %c0 = arith.constant 0 : index
    %c0_1 = arith.constant 0 : index
    %3 = vector.load %arg7[%c0, %c0_1] : memref<16x64xf32, #tpu.memory_space<vmem>>, vector<16x64xf32>
    %c0_2 = arith.constant 0 : index
    %c0_3 = arith.constant 0 : index
    %4 = vector.load %arg3[%c0_2, %c0_3] : memref<16x32xbf16, #tpu.memory_space<vmem>>, vector<16x32xbf16>
    %c0_4 = arith.constant 0 : index
    %c0_5 = arith.constant 0 : index
    %5 = vector.load %arg4[%c0_4, %c0_5] : memref<32x64xbf16, #tpu.memory_space<vmem>>, vector<32x64xbf16>
    %cst = arith.constant dense<0.000000e+00> : vector<16x64xf32>
    %6 = tpu.matmul %4, %5, %cst {dimension_numbers = #tpu.dot_dimension_numbers<[1], [0], [0], [1], [0, 0, 1, 1], [], []>} : vector<16x32xbf16>, vector<32x64xbf16>, vector<16x64xf32> -> vector<16x64xf32>
    %7 = arith.addf %3, %6 : vector<16x64xf32>
    %c0_6 = arith.constant 0 : index
    %c0_7 = arith.constant 0 : index
    %8 = vector.load %arg7[%c0_6, %c0_7] : memref<16x64xf32, #tpu.memory_space<vmem>>, vector<16x64xf32>
    tpu.vector_store %arg7[%c0_6, %c0_7], %7 {strides = array<i32>} : memref<16x64xf32, #tpu.memory_space<vmem>>, vector<16x64xf32>,
    %c0_i32_8 = arith.constant 0 : i32
    %9 = arith.cmpi eq, %arg2, %c0_i32_8 : i32
    %10 = arith.extui %9 : i1 to i32
    %c0_i32_9 = arith.constant 0 : i32
    %11 = arith.cmpi ne, %10, %c0_i32_9 : i32
    scf.if %11 {
      %c0_10 = arith.constant 0 : index
      %c0_11 = arith.constant 0 : index
      %12 = vector.load %arg7[%c0_10, %c0_11] : memref<16x64xf32, #tpu.memory_space<vmem>>, vector<16x64xf32>
      %c0_12 = arith.constant 0 : index
      %c0_13 = arith.constant 0 : index
      %13 = vector.load %arg5[%c0_12, %c0_13] : memref<1x64xf32, #tpu.memory_space<vmem>>, vector<1x64xf32>
      %14 = vector.broadcast %13 : vector<1x64xf32> to vector<16x64xf32>
      %15 = arith.addf %12, %14 : vector<16x64xf32>
      %cst_14 = arith.constant 0.000000e+00 : f32
      %16 = vector.broadcast %cst_14 : f32 to vector<16x64xf32>
      %17 = arith.maximumf %15, %16 : vector<16x64xf32>
      %18 = arith.truncf %17 : vector<16x64xf32> to vector<16x64xbf16>
      %c0_15 = arith.constant 0 : index
      %c0_16 = arith.constant 0 : index
      %19 = vector.load %arg6[%c0_15, %c0_16] : memref<16x64xbf16, #tpu.memory_space<vmem>>, vector<16x64xbf16>
      tpu.vector_store %arg6[%c0_15, %c0_16], %18 {strides = array<i32>} : memref<16x64xbf16, #tpu.memory_space<vmem>>, vector<16x64xbf16>,
    } else {
    }
    return
  }
  func.func @transform_0(%arg0: i32, %arg1: i32, %arg2: i32) -> (i32, i32) {
    %c0_i32 = arith.constant 0 : i32
    return %arg0, %arg2 : i32, i32
  }
  func.func @transform_1(%arg0: i32, %arg1: i32, %arg2: i32) -> (i32, i32) {
    %c0_i32 = arith.constant 0 : i32
    return %arg2, %arg1 : i32, i32
  }
  func.func @transform_2(%arg0: i32, %arg1: i32, %arg2: i32) -> (i32, i32) {
    %c0_i32 = arith.constant 0 : i32
    %c0_i32_0 = arith.constant 0 : i32
    return %c0_i32, %arg1 : i32, i32
  }
  func.func @transform_3(%arg0: i32, %arg1: i32, %arg2: i32) -> (i32, i32) {
    %c0_i32 = arith.constant 0 : i32
    return %arg0, %arg1 : i32, i32
  }
}

module attributes {stable_mosaic.version = 11 : i64} {
  func.func @_matmul_kernel(%arg0: i32, %arg1: i32, %arg2: i32, %arg3: memref<16x32xbf16, #tpu.memory_space<vmem>>, %arg4: memref<32x64xbf16, #tpu.memory_space<vmem>>, %arg5: memref<1x64xf32, #tpu.memory_space<vmem>>, %arg6: memref<16x64xbf16, #tpu.memory_space<vmem>>, %arg7: memref<16x64xf32, #tpu.memory_space<vmem>>) attributes {dimension_semantics = [#tpu.dimension_semantics<parallel>, #tpu.dimension_semantics<parallel>, #tpu.dimension_semantics<arbitrary>], iteration_bounds = array<i64: 1, 1, 1>, scalar_prefetch = 0 : i64, scratch_operands = 1 : i64, tpu.core_type = #tpu.core_type<tc>, window_params = [{transform_indices = @transform_0, window_bounds = array<i64: 16, 32>}, {transform_indices = @transform_1, window_bounds = array<i64: 32, 64>}, {transform_indices = @transform_2, window_bounds = array<i64: 1, 64>}, {transform_indices = @transform_3, window_bounds = array<i64: 16, 64>}]} {
    %c0_i32 = arith.constant 0 : i32
    %0 = arith.cmpi eq, %arg2, %c0_i32 : i32
    %1 = arith.extui %0 : i1 to i32
    %c0_i32_0 = arith.constant 0 : i32
    %2 = arith.cmpi ne, %1, %c0_i32_0 : i32
    scf.if %2 {
      %cst_10 = arith.constant 0.000000e+00 : f32
      %12 = vector.broadcast %cst_10 : f32 to vector<16x64xf32>
      %c0_11 = arith.constant 0 : index
      %c0_12 = arith.constant 0 : index
      %13 = vector.load %arg7[%c0_11, %c0_12] : memref<16x64xf32, #tpu.memory_space<vmem>>, vector<16x64xf32>
      tpu.vector_store %arg7[%c0_11, %c0_12], %12 {strides = array<i32>} : memref<16x64xf32, #tpu.memory_space<vmem>>, vector<16x64xf32>,
    } else {
    }
    %c0 = arith.constant 0 : index
    %c0_1 = arith.constant 0 : index
    %3 = vector.load %arg7[%c0, %c0_1] : memref<16x64xf32, #tpu.memory_space<vmem>>, vector<16x64xf32>
    %c0_2 = arith.constant 0 : index
    %c0_3 = arith.constant 0 : index
    %4 = vector.load %arg3[%c0_2, %c0_3] : memref<16x32xbf16, #tpu.memory_space<vmem>>, vector<16x32xbf16>
    %c0_4 = arith.constant 0 : index
    %c0_5 = arith.constant 0 : index
    %5 = vector.load %arg4[%c0_4, %c0_5] : memref<32x64xbf16, #tpu.memory_space<vmem>>, vector<32x64xbf16>
    %cst = arith.constant dense<0.000000e+00> : vector<16x64xf32>
    %6 = tpu.matmul %4, %5, %cst {dimension_numbers = #tpu.dot_dimension_numbers<[1], [0], [0], [1], [0, 0, 1, 1], [], []>} : vector<16x32xbf16>, vector<32x64xbf16>, vector<16x64xf32> -> vector<16x64xf32>
    %7 = arith.addf %3, %6 : vector<16x64xf32>
    %c0_6 = arith.constant 0 : index
    %c0_7 = arith.constant 0 : index
    %8 = vector.load %arg7[%c0_6, %c0_7] : memref<16x64xf32, #tpu.memory_space<vmem>>, vector<16x64xf32>
    tpu.vector_store %arg7[%c0_6, %c0_7], %7 {strides = array<i32>} : memref<16x64xf32, #tpu.memory_space<vmem>>, vector<16x64xf32>,
    %c0_i32_8 = arith.constant 0 : i32
    %9 = arith.cmpi eq, %arg2, %c0_i32_8 : i32
    %10 = arith.extui %9 : i1 to i32
    %c0_i32_9 = arith.constant 0 : i32
    %11 = arith.cmpi ne, %10, %c0_i32_9 : i32
    scf.if %11 {
      %c0_10 = arith.constant 0 : index
      %c0_11 = arith.constant 0 : index
      %12 = vector.load %arg7[%c0_10, %c0_11] : memref<16x64xf32, #tpu.memory_space<vmem>>, vector<16x64xf32>
      %c0_12 = arith.constant 0 : index
      %c0_13 = arith.constant 0 : index
      %13 = vector.load %arg5[%c0_12, %c0_13] : memref<1x64xf32, #tpu.memory_space<vmem>>, vector<1x64xf32>
      %14 = vector.broadcast %13 : vector<1x64xf32> to vector<16x64xf32>
      %15 = arith.addf %12, %14 : vector<16x64xf32>
      %16 = arith.truncf %15 : vector<16x64xf32> to vector<16x64xbf16>
      %c0_14 = arith.constant 0 : index
      %c0_15 = arith.constant 0 : index
      %17 = vector.load %arg6[%c0_14, %c0_15] : memref<16x64xbf16, #tpu.memory_space<vmem>>, vector<16x64xbf16>
      tpu.vector_store %arg6[%c0_14, %c0_15], %16 {strides = array<i32>} : memref<16x64xbf16, #tpu.memory_space<vmem>>, vector<16x64xbf16>,
    } else {
    }
    return
  }
  func.func @transform_0(%arg0: i32, %arg1: i32, %arg2: i32) -> (i32, i32) {
    %c0_i32 = arith.constant 0 : i32
    return %arg0, %arg2 : i32, i32
  }
  func.func @transform_1(%arg0: i32, %arg1: i32, %arg2: i32) -> (i32, i32) {
    %c0_i32 = arith.constant 0 : i32
    return %arg2, %arg1 : i32, i32
  }
  func.func @transform_2(%arg0: i32, %arg1: i32, %arg2: i32) -> (i32, i32) {
    %c0_i32 = arith.constant 0 : i32
    %c0_i32_0 = arith.constant 0 : i32
    return %c0_i32, %arg1 : i32, i32
  }
  func.func @transform_3(%arg0: i32, %arg1: i32, %arg2: i32) -> (i32, i32) {
    %c0_i32 = arith.constant 0 : i32
    return %arg0, %arg1 : i32, i32
  }
}

module attributes {stable_mosaic.version = 11 : i64} {
  func.func @_matmul_kernel(%arg0: i32, %arg1: i32, %arg2: i32, %arg3: memref<16x64xbf16, #tpu.memory_space<vmem>>, %arg4: memref<64x32xbf16, #tpu.memory_space<vmem>>, %arg5: memref<1x32xf32, #tpu.memory_space<vmem>>, %arg6: memref<16x32xbf16, #tpu.memory_space<vmem>>, %arg7: memref<16x32xbf16, #tpu.memory_space<vmem>>, %arg8: memref<16x32xf32, #tpu.memory_space<vmem>>) attributes {dimension_semantics = [#tpu.dimension_semantics<parallel>, #tpu.dimension_semantics<parallel>, #tpu.dimension_semantics<arbitrary>], iteration_bounds = array<i64: 1, 1, 1>, scalar_prefetch = 0 : i64, scratch_operands = 1 : i64, tpu.core_type = #tpu.core_type<tc>, window_params = [{transform_indices = @transform_0, window_bounds = array<i64: 16, 64>}, {transform_indices = @transform_1, window_bounds = array<i64: 64, 32>}, {transform_indices = @transform_2, window_bounds = array<i64: 1, 32>}, {transform_indices = @transform_3, window_bounds = array<i64: 16, 32>}, {transform_indices = @transform_4, window_bounds = array<i64: 16, 32>}]} {
    %c0_i32 = arith.constant 0 : i32
    %0 = arith.cmpi eq, %arg2, %c0_i32 : i32
    %1 = arith.extui %0 : i1 to i32
    %c0_i32_0 = arith.constant 0 : i32
    %2 = arith.cmpi ne, %1, %c0_i32_0 : i32
    scf.if %2 {
      %cst_10 = arith.constant 0.000000e+00 : f32
      %12 = vector.broadcast %cst_10 : f32 to vector<16x32xf32>
      %c0_11 = arith.constant 0 : index
      %c0_12 = arith.constant 0 : index
      %13 = vector.load %arg8[%c0_11, %c0_12] : memref<16x32xf32, #tpu.memory_space<vmem>>, vector<16x32xf32>
      tpu.vector_store %arg8[%c0_11, %c0_12], %12 {strides = array<i32>} : memref<16x32xf32, #tpu.memory_space<vmem>>, vector<16x32xf32>,
    } else {
    }
    %c0 = arith.constant 0 : index
    %c0_1 = arith.constant 0 : index
    %3 = vector.load %arg8[%c0, %c0_1] : memref<16x32xf32, #tpu.memory_space<vmem>>, vector<16x32xf32>
    %c0_2 = arith.constant 0 : index
    %c0_3 = arith.constant 0 : index
    %4 = vector.load %arg3[%c0_2, %c0_3] : memref<16x64xbf16, #tpu.memory_space<vmem>>, vector<16x64xbf16>
    %c0_4 = arith.constant 0 : index
    %c0_5 = arith.constant 0 : index
    %5 = vector.load %arg4[%c0_4, %c0_5] : memref<64x32xbf16, #tpu.memory_space<vmem>>, vector<64x32xbf16>
    %cst = arith.constant dense<0.000000e+00> : vector<16x32xf32>
    %6 = tpu.matmul %4, %5, %cst {dimension_numbers = #tpu.dot_dimension_numbers<[1], [0], [0], [1], [0, 0, 1, 1], [], []>} : vector<16x64xbf16>, vector<64x32xbf16>, vector<16x32xf32> -> vector<16x32xf32>
    %7 = arith.addf %3, %6 : vector<16x32xf32>
    %c0_6 = arith.constant 0 : index
    %c0_7 = arith.constant 0 : index
    %8 = vector.load %arg8[%c0_6, %c0_7] : memref<16x32xf32, #tpu.memory_space<vmem>>, vector<16x32xf32>
    tpu.vector_store %arg8[%c0_6, %c0_7], %7 {strides = array<i32>} : memref<16x32xf32, #tpu.memory_space<vmem>>, vector<16x32xf32>,
    %c0_i32_8 = arith.constant 0 : i32
    %9 = arith.cmpi eq, %arg2, %c0_i32_8 : i32
    %10 = arith.extui %9 : i1 to i32
    %c0_i32_9 = arith.constant 0 : i32
    %11 = arith.cmpi ne, %10, %c0_i32_9 : i32
    scf.if %11 {
      %c0_10 = arith.constant 0 : index
      %c0_11 = arith.constant 0 : index
      %12 = vector.load %arg8[%c0_10, %c0_11] : memref<16x32xf32, #tpu.memory_space<vmem>>, vector<16x32xf32>
      %c0_12 = arith.constant 0 : index
      %c0_13 = arith.constant 0 : index
      %13 = vector.load %arg5[%c0_12, %c0_13] : memref<1x32xf32, #tpu.memory_space<vmem>>, vector<1x32xf32>
      %14 = vector.broadcast %13 : vector<1x32xf32> to vector<16x32xf32>
      %15 = arith.addf %12, %14 : vector<16x32xf32>
      %c0_14 = arith.constant 0 : index
      %c0_15 = arith.constant 0 : index
      %16 = vector.load %arg6[%c0_14, %c0_15] : memref<16x32xbf16, #tpu.memory_space<vmem>>, vector<16x32xbf16>
      %17 = arith.extf %16 : vector<16x32xbf16> to vector<16x32xf32>
      %18 = arith.addf %15, %17 : vector<16x32xf32>
      %19 = arith.truncf %18 : vector<16x32xf32> to vector<16x32xbf16>
      %c0_16 = arith.constant 0 : index
      %c0_17 = arith.constant 0 : index
      %20 = vector.load %arg7[%c0_16, %c0_17] : memref<16x32xbf16, #tpu.memory_space<vmem>>, vector<16x32xbf16>
      tpu.vector_store %arg7[%c0_16, %c0_17], %19 {strides = array<i32>} : memref<16x32xbf16, #tpu.memory_space<vmem>>, vector<16x32xbf16>,
    } else {
    }
    return
  }
  func.func @transform_0(%arg0: i32, %arg1: i32, %arg2: i32) -> (i32, i32) {
    %c0_i32 = arith.constant 0 : i32
    return %arg0, %arg2 : i32, i32
  }
  func.func @transform_1(%arg0: i32, %arg1: i32, %arg2: i32) -> (i32, i32) {
    %c0_i32 = arith.constant 0 : i32
    return %arg2, %arg1 : i32, i32
  }
  func.func @transform_2(%arg0: i32, %arg1: i32, %arg2: i32) -> (i32, i32) {
    %c0_i32 = arith.constant 0 : i32
    %c0_i32_0 = arith.constant 0 : i32
    return %c0_i32, %arg1 : i32, i32
  }
  func.func @transform_3(%arg0: i32, %arg1: i32, %arg2: i32) -> (i32, i32) {
    %c0_i32 = arith.constant 0 : i32
    return %arg0, %arg1 : i32, i32
  }
  func.func @transform_4(%arg0: i32, %arg1: i32, %arg2: i32) -> (i32, i32) {
    %c0_i32 = arith.constant 0 : i32
    return %arg0, %arg1 : i32, i32
  }
}

module attributes {stable_mosaic.version = 11 : i64} {
  func.func @_sub_lse_kernel(%arg0: i32, %arg1: i32, %arg2: memref<16x16xf32, #tpu.memory_space<vmem>>, %arg3: memref<16x1xf32, #tpu.memory_space<vmem>>, %arg4: memref<16x16xf32, #tpu.memory_space<vmem>>) attributes {dimension_semantics = [#tpu.dimension_semantics<parallel>, #tpu.dimension_semantics<parallel>], iteration_bounds = array<i64: 1, 1>, scalar_prefetch = 0 : i64, scratch_operands = 0 : i64, tpu.core_type = #tpu.core_type<tc>, window_params = [{transform_indices = @transform_0, window_bounds = array<i64: 16, 16>}, {transform_indices = @transform_1, window_bounds = array<i64: 16, 1>}, {transform_indices = @transform_2, window_bounds = array<i64: 16, 16>}]} {
    %c0 = arith.constant 0 : index
    %c0_0 = arith.constant 0 : index
    %0 = vector.load %arg2[%c0, %c0_0] : memref<16x16xf32, #tpu.memory_space<vmem>>, vector<16x16xf32>
    %c0_1 = arith.constant 0 : index
    %c0_2 = arith.constant 0 : index
    %1 = vector.load %arg3[%c0_1, %c0_2] : memref<16x1xf32, #tpu.memory_space<vmem>>, vector<16x1xf32>
    %2 = vector.broadcast %1 : vector<16x1xf32> to vector<16x16xf32>
    %3 = arith.subf %0, %2 : vector<16x16xf32>
    %c0_3 = arith.constant 0 : index
    %c0_4 = arith.constant 0 : index
    %4 = vector.load %arg4[%c0_3, %c0_4] : memref<16x16xf32, #tpu.memory_space<vmem>>, vector<16x16xf32>
    tpu.vector_store %arg4[%c0_3, %c0_4], %3 {strides = array<i32>} : memref<16x16xf32, #tpu.memory_space<vmem>>, vector<16x16xf32>,
    return
  }
  func.func @transform_0(%arg0: i32, %arg1: i32) -> (i32, i32) {
    %c0_i32 = arith.constant 0 : i32
    return %arg0, %arg1 : i32, i32
  }
  func.func @transform_1(%arg0: i32, %arg1: i32) -> (i32, i32) {
    %c0_i32 = arith.constant 0 : i32
    %c0_i32_0 = arith.constant 0 : i32
    return %arg0, %c0_i32 : i32, i32
  }
  func.func @transform_2(%arg0: i32, %arg1: i32) -> (i32, i32) {
    %c0_i32 = arith.constant 0 : i32
    return %arg0, %arg1 : i32, i32
  }
}

module attributes {stable_mosaic.version = 11 : i64} {
  func.func @_proj_lse_kernel(%arg0: i32, %arg1: i32, %arg2: i32, %arg3: memref<16x32xbf16, #tpu.memory_space<vmem>>, %arg4: memref<32x16xbf16, #tpu.memory_space<vmem>>, %arg5: memref<1x16xf32, #tpu.memory_space<vmem>>, %arg6: memref<16x16xf32, #tpu.memory_space<vmem>>, %arg7: memref<16x1xf32, #tpu.memory_space<vmem>>, %arg8: memref<16x16xf32, #tpu.memory_space<vmem>>, %arg9: memref<16x1xf32, #tpu.memory_space<vmem>>, %arg10: memref<16x1xf32, #tpu.memory_space<vmem>>) attributes {dimension_semantics = [#tpu.dimension_semantics<parallel>, #tpu.dimension_semantics<arbitrary>, #tpu.dimension_semantics<arbitrary>], iteration_bounds = array<i64: 1, 1, 1>, scalar_prefetch = 0 : i64, scratch_operands = 3 : i64, tpu.core_type = #tpu.core_type<tc>, window_params = [{transform_indices = @transform_0, window_bounds = array<i64: 16, 32>}, {transform_indices = @transform_1, window_bounds = array<i64: 32, 16>}, {transform_indices = @transform_2, window_bounds = array<i64: 1, 16>}, {transform_indices = @transform_3, window_bounds = array<i64: 16, 16>}, {transform_indices = @transform_4, window_bounds = array<i64: 16, 1>}]} {
    %c0_i32 = arith.constant 0 : i32
    %0 = arith.cmpi eq, %arg2, %c0_i32 : i32
    %1 = arith.extui %0 : i1 to i32
    %c0_i32_0 = arith.constant 0 : i32
    %2 = arith.cmpi ne, %1, %c0_i32_0 : i32
    scf.if %2 {
      %cst_16 = arith.constant 0.000000e+00 : f32
      %22 = vector.broadcast %cst_16 : f32 to vector<16x16xf32>
      %c0_17 = arith.constant 0 : index
      %c0_18 = arith.constant 0 : index
      %23 = vector.load %arg8[%c0_17, %c0_18] : memref<16x16xf32, #tpu.memory_space<vmem>>, vector<16x16xf32>
      tpu.vector_store %arg8[%c0_17, %c0_18], %22 {strides = array<i32>} : memref<16x16xf32, #tpu.memory_space<vmem>>, vector<16x16xf32>,
    } else {
    }
    %c0_i32_1 = arith.constant 0 : i32
    %3 = arith.cmpi eq, %arg1, %c0_i32_1 : i32
    %c0_i32_2 = arith.constant 0 : i32
    %4 = arith.cmpi eq, %arg2, %c0_i32_2 : i32
    %5 = arith.andi %3, %4 : i1
    %6 = arith.extui %5 : i1 to i32
    %c0_i32_3 = arith.constant 0 : i32
    %7 = arith.cmpi ne, %6, %c0_i32_3 : i32
    scf.if %7 {
      %cst_16 = arith.constant 0xFF800000 : f32
      %22 = vector.broadcast %cst_16 : f32 to vector<16x1xf32>
      %c0_17 = arith.constant 0 : index
      %c0_18 = arith.constant 0 : index
      %23 = vector.load %arg9[%c0_17, %c0_18] : memref<16x1xf32, #tpu.memory_space<vmem>>, vector<16x1xf32>
      tpu.vector_store %arg9[%c0_17, %c0_18], %22 {strides = array<i32>} : memref<16x1xf32, #tpu.memory_space<vmem>>, vector<16x1xf32>,
      %cst_19 = arith.constant 0.000000e+00 : f32
      %24 = vector.broadcast %cst_19 : f32 to vector<16x1xf32>
      %c0_20 = arith.constant 0 : index
      %c0_21 = arith.constant 0 : index
      %25 = vector.load %arg10[%c0_20, %c0_21] : memref<16x1xf32, #tpu.memory_space<vmem>>, vector<16x1xf32>
      tpu.vector_store %arg10[%c0_20, %c0_21], %24 {strides = array<i32>} : memref<16x1xf32, #tpu.memory_space<vmem>>, vector<16x1xf32>,
    } else {
    }
    %c0 = arith.constant 0 : index
    %c0_4 = arith.constant 0 : index
    %8 = vector.load %arg8[%c0, %c0_4] : memref<16x16xf32, #tpu.memory_space<vmem>>, vector<16x16xf32>
    %c0_5 = arith.constant 0 : index
    %c0_6 = arith.constant 0 : index
    %9 = vector.load %arg3[%c0_5, %c0_6] : memref<16x32xbf16, #tpu.memory_space<vmem>>, vector<16x32xbf16>
    %c0_7 = arith.constant 0 : index
    %c0_8 = arith.constant 0 : index
    %10 = vector.load %arg4[%c0_7, %c0_8] : memref<32x16xbf16, #tpu.memory_space<vmem>>, vector<32x16xbf16>
    %cst = arith.constant dense<0.000000e+00> : vector<16x16xf32>
    %11 = tpu.matmul %9, %10, %cst {dimension_numbers = #tpu.dot_dimension_numbers<[1], [0], [0], [1], [0, 0, 1, 1], [], []>} : vector<16x32xbf16>, vector<32x16xbf16>, vector<16x16xf32> -> vector<16x16xf32>
    %12 = arith.addf %8, %11 : vector<16x16xf32>
    %c0_9 = arith.constant 0 : index
    %c0_10 = arith.constant 0 : index
    %13 = vector.load %arg8[%c0_9, %c0_10] : memref<16x16xf32, #tpu.memory_space<vmem>>, vector<16x16xf32>
    tpu.vector_store %arg8[%c0_9, %c0_10], %12 {strides = array<i32>} : memref<16x16xf32, #tpu.memory_space<vmem>>, vector<16x16xf32>,
    %c0_i32_11 = arith.constant 0 : i32
    %14 = arith.cmpi eq, %arg2, %c0_i32_11 : i32
    %15 = arith.extui %14 : i1 to i32
    %c0_i32_12 = arith.constant 0 : i32
    %16 = arith.cmpi ne, %15, %c0_i32_12 : i32
    scf.if %16 {
      %c0_16 = arith.constant 0 : index
      %c0_17 = arith.constant 0 : index
      %22 = vector.load %arg8[%c0_16, %c0_17] : memref<16x16xf32, #tpu.memory_space<vmem>>, vector<16x16xf32>
      %c0_18 = arith.constant 0 : index
      %c0_19 = arith.constant 0 : index
      %23 = vector.load %arg5[%c0_18, %c0_19] : memref<1x16xf32, #tpu.memory_space<vmem>>, vector<1x16xf32>
      %24 = vector.broadcast %23 : vector<1x16xf32> to vector<16x16xf32>
      %25 = arith.addf %22, %24 : vector<16x16xf32>
      %c0_20 = arith.constant 0 : index
      %c0_21 = arith.constant 0 : index
      %26 = vector.load %arg6[%c0_20, %c0_21] : memref<16x16xf32, #tpu.memory_space<vmem>>, vector<16x16xf32>
      tpu.vector_store %arg6[%c0_20, %c0_21], %25 {strides = array<i32>} : memref<16x16xf32, #tpu.memory_space<vmem>>, vector<16x16xf32>,
      %c0_22 = arith.constant 0 : index
      %c0_23 = arith.constant 0 : index
      %27 = vector.load %arg9[%c0_22, %c0_23] : memref<16x1xf32, #tpu.memory_space<vmem>>, vector<16x1xf32>
      %cst_24 = arith.constant dense<0xFF800000> : vector<16xf32>
      %28 = vector.multi_reduction <maximumf>, %25, %cst_24 [1] : vector<16x16xf32> to vector<16xf32>
      %29 = vector.shape_cast %28 : vector<16xf32> to vector<16x1xf32>
      %30 = arith.maximumf %27, %29 : vector<16x1xf32>
      %c0_25 = arith.constant 0 : index
      %c0_26 = arith.constant 0 : index
      %31 = vector.load %arg10[%c0_25, %c0_26] : memref<16x1xf32, #tpu.memory_space<vmem>>, vector<16x1xf32>
      %32 = arith.subf %27, %30 : vector<16x1xf32>
      %33 = math.exp %32 : vector<16x1xf32>
      %34 = arith.mulf %31, %33 : vector<16x1xf32>
      %35 = vector.broadcast %30 : vector<16x1xf32> to vector<16x16xf32>
      %36 = arith.subf %25, %35 : vector<16x16xf32>
      %37 = math.exp %36 : vector<16x16xf32>
      %cst_27 = arith.constant dense<0.000000e+00> : vector<16xf32>
      %38 = vector.multi_reduction <add>, %37, %cst_27 [1] : vector<16x16xf32> to vector<16xf32>
      %39 = vector.shape_cast %38 : vector<16xf32> to vector<16x1xf32>
      %40 = arith.addf %34, %39 : vector<16x1xf32>
      %c0_28 = arith.constant 0 : index
      %c0_29 = arith.constant 0 : index
      %41 = vector.load %arg10[%c0_28, %c0_29] : memref<16x1xf32, #tpu.memory_space<vmem>>, vector<16x1xf32>
      tpu.vector_store %arg10[%c0_28, %c0_29], %40 {strides = array<i32>} : memref<16x1xf32, #tpu.memory_space<vmem>>, vector<16x1xf32>,
      %c0_30 = arith.constant 0 : index
      %c0_31 = arith.constant 0 : index
      %42 = vector.load %arg9[%c0_30, %c0_31] : memref<16x1xf32, #tpu.memory_space<vmem>>, vector<16x1xf32>
      tpu.vector_store %arg9[%c0_30, %c0_31], %30 {strides = array<i32>} : memref<16x1xf32, #tpu.memory_space<vmem>>, vector<16x1xf32>,
    } else {
    }
    %c0_i32_13 = arith.constant 0 : i32
    %17 = arith.cmpi eq, %arg1, %c0_i32_13 : i32
    %c0_i32_14 = arith.constant 0 : i32
    %18 = arith.cmpi eq, %arg2, %c0_i32_14 : i32
    %19 = arith.andi %17, %18 : i1
    %20 = arith.extui %19 : i1 to i32
    %c0_i32_15 = arith.constant 0 : i32
    %21 = arith.cmpi ne, %20, %c0_i32_15 : i32
    scf.if %21 {
      %c0_16 = arith.constant 0 : index
      %c0_17 = arith.constant 0 : index
      %22 = vector.load %arg9[%c0_16, %c0_17] : memref<16x1xf32, #tpu.memory_space<vmem>>, vector<16x1xf32>
      %c0_18 = arith.constant 0 : index
      %c0_19 = arith.constant 0 : index
      %23 = vector.load %arg10[%c0_18, %c0_19] : memref<16x1xf32, #tpu.memory_space<vmem>>, vector<16x1xf32>
      %24 = math.log %23 : vector<16x1xf32>
      %25 = arith.addf %22, %24 : vector<16x1xf32>
      %c0_20 = arith.constant 0 : index
      %c0_21 = arith.constant 0 : index
      %26 = vector.load %arg7[%c0_20, %c0_21] : memref<16x1xf32, #tpu.memory_space<vmem>>, vector<16x1xf32>
      tpu.vector_store %arg7[%c0_20, %c0_21], %25 {strides = array<i32>} : memref<16x1xf32, #tpu.memory_space<vmem>>, vector<16x1xf32>,
    } else {
    }
    return
  }
  func.func @transform_0(%arg0: i32, %arg1: i32, %arg2: i32) -> (i32, i32) {
    %c0_i32 = arith.constant 0 : i32
    return %arg0, %arg2 : i32, i32
  }
  func.func @transform_1(%arg0: i32, %arg1: i32, %arg2: i32) -> (i32, i32) {
    %c0_i32 = arith.constant 0 : i32
    return %arg2, %arg1 : i32, i32
  }
  func.func @transform_2(%arg0: i32, %arg1: i32, %arg2: i32) -> (i32, i32) {
    %c0_i32 = arith.constant 0 : i32
    %c0_i32_0 = arith.constant 0 : i32
    return %c0_i32, %arg1 : i32, i32
  }
  func.func @transform_3(%arg0: i32, %arg1: i32, %arg2: i32) -> (i32, i32) {
    %c0_i32 = arith.constant 0 : i32
    return %arg0, %arg1 : i32, i32
  }
  func.func @transform_4(%arg0: i32, %arg1: i32, %arg2: i32) -> (i32, i32) {
    %c0_i32 = arith.constant 0 : i32
    %c0_i32_0 = arith.constant 0 : i32
    return %arg0, %c0_i32 : i32, i32
  }
}

</mosaic_0001>

<bundles_post_ra>
// kernel: transformer_forward.58
= control target key start
LH: loop header
LB: loop body
LE: loop exit
PB: predicated region body
PF: predicated region fallthrough
CT: control target
= control target key end

     0   :  { %vm19_vm0 = vcmask 785408   ;;  %v151_v0 = vmov 0.0   ;;  %vm152_vm1 = vmmov 0   ;;  %vm47_vm2 = vcmask 261120   ;;  %s195_s1 = inlined_call_operand.vmem [shape: bf16[32,96], index: 1, kind: input, shape index: {}]   ;;  %s196_s0 = inlined_call_operand.vmem [shape: bf16[16,32], index: 0, kind: input, shape index: {}]   ;;  %s197_s2 = inlined_call_operand.vmem [shape: f32[1,96], index: 2, kind: input, shape index: {}]   ;;  %s198_s3 = inlined_call_operand.vmem [shape: bf16[16,96], index: 3, kind: output, shape index: {}]  }
   0x1   :  { %138 = vmatprep.subr.bf16.mxu0 %v151_v0  ;;  %v148_v1 = vld [vmem:[%s195_s1] sm:$0xff]   ;;  %142 = vmatprep.mubr.msk.bf16.mxu0 %vm152_vm1, %v151_v0  ;;  %20 = vst.msk [vmem:[#allocation2] sm:$0xff] %vm19_vm0, %v151_v0  ;;  %21 = vst.msk [vmem:[#allocation2 + $0x8] sm:$0xff] %vm19_vm0, %v151_v0  ;;  %v149_v2 = vld [vmem:[%s195_s1 + $0x8] sm:$0xff]   ;;  %vm119_vm3 = vcmask 781312  }
   0x2   :  { %139 = vmatpush3.bf16.msra.mxu0 %v148_v1  ;;  %v150_v3 = vld [vmem:[%s196_s0] sm:$0xff]  }
   0x3   :  { %140 = vmatprep.subr.bf16.mxu0 %v151_v0  ;;  %v130_v12 = vld [vmem:[%s197_s2] ss:$0 sm:$0xff] }
   0x6   :  { %141 = vmatpush3.bf16.msra.mxu0 %v149_v2 }
   0x8   :  { %v22_v4 = vld [vmem:[#allocation2] sm:$0xff]  ;;  %v23_v6 = vld [vmem:[#allocation2 + $0x8] sm:$0xff] }
   0x9   :  { %143 = vmatmul.mubr.msk.bf16.vlgmr.msra.gmra.mrb[0].mxu0 %vm47_vm2, %v150_v3 }
  0xdc   :  { %v85_v5 = vpop.f32.mrb[0].mxu0 }
  0xdd   :  { %v92_v7 = vadd.f32 %v85_v5, %v22_v4  ;;  %v144_v8 = vpop.f32.mrb[1].mxu0 }
  0xde   :  { %v88_v9 = vpop.f32.mrb[2].mxu0 }
  0xdf   :  { %95 = vst.msk [vmem:[#allocation2] sm:$0xff] %vm19_vm0, %v92_v7  ;;  %v93_v10 = vadd.f32 %v88_v9, %v23_v6  ;;  %v145_v11 = vpop.f32.mrb[3].mxu0 }
  0xe1   :  { %96 = vst.msk [vmem:[#allocation2 + $0x8] sm:$0xff] %vm19_vm0, %v93_v10 }
  0xe6   :  { %v100_v13 = vld [vmem:[#allocation2] sm:$0xff] }
  0xe7   :  { %v109_v14 = vadd.f32 %v130_v12, %v100_v13 }
  0xe8   :  { %v101_v15 = vld [vmem:[#allocation2 + $0x8] sm:$0xff] }
  0xe9   :  { %v133_v16 = vpack.c.bf16 %v109_v14, %v109_v14  ;;  %v110_v17 = vadd.f32 %v130_v12, %v101_v15 }
  0xeb   :  { %120 = vst.msk [vmem:[%s198_s3] sm:$0xf] %vm119_vm3, %v133_v16  ;;  %v134_v18 = vpack.c.bf16 %v110_v17, %v110_v17 }
  0xed   :  { %121 = vst.msk [vmem:[%s198_s3 + $0x4] sm:$0xf] %vm119_vm3, %v134_v18 }

// kernel: transformer_forward.57
= control target key start
LH: loop header
LB: loop body
LE: loop exit
PB: predicated region body
PF: predicated region fallthrough
CT: control target
= control target key end

     0   :  { %vm18_vm0 = vcmask 261120   ;;  %vm89_vm5 = vcmask 257024   ;;  %s153_s0 = inlined_call_operand.vmem [shape: bf16[16,32], index: 0, kind: input, shape index: {}]   ;;  %s154_s1 = inlined_call_operand.vmem [shape: f32[1,32], index: 1, kind: input, shape index: {}]   ;;  %s155_s2 = inlined_call_operand.vmem [shape: f32[1,32], index: 2, kind: input, shape index: {}]   ;;  %s156_s3 = inlined_call_operand.vmem [shape: bf16[16,32], index: 3, kind: output, shape index: {}]  }
   0x1   :  { %v103_v0 = vld [vmem:[%s153_s0] sm:$0xff]  }
   0x2   :  { %v104_v1 = vunpack.c.l.bf16 %v103_v0  ;;  %v105_v2 = vunpack.c.h.bf16 %v103_v0  ;;  %v96_v31 = vld [vmem:[%s154_s1] ss:$0 sm:$0xff] }
   0x3   :  { %v97_v34 = vld [vmem:[%s155_s2] ss:$0 sm:$0xff] }
   0x4   :  { %v19_v3 = vsel %vm18_vm0, %v104_v1, 0.0  ;;  %v22_v4 = vsel %vm18_vm0, %v105_v2, 0.0 }
   0x5   :  { %20 = vadd.xlane.f32.xlu0 %v19_v3 }
   0x9   :  { %23 = vadd.xlane.f32.xlu0 %v22_v4 }
  0x92   :  { %v21_v5 = vpop.xlane.xlu0 %20 }
  0x93   :  { %v26_v6 = vmul.f32 0.03125, %v21_v5 }
  0x95   :  { %v28_v7 = vsub.f32 %v104_v1, %v26_v6 }
  0x96   :  { %v24_v8 = vpop.xlane.xlu0 %23 }
  0x97   :  { %v27_v9 = vmul.f32 0.03125, %v24_v8  ;;  %v30_v10 = vmul.f32 %v28_v7, %v28_v7  ;;  %v68_v32 = vmul.f32 %v96_v31, %v28_v7 }
  0x99   :  { %v29_v11 = vsub.f32 %v105_v2, %v27_v9  ;;  %v32_v12 = vsel %vm18_vm0, %v30_v10, 0.0 }
  0x9a   :  { %33 = vadd.xlane.f32.xlu1 %v32_v12 }
  0x9b   :  { %v31_v13 = vmul.f32 %v29_v11, %v29_v11  ;;  %v69_v36 = vmul.f32 %v96_v31, %v29_v11 }
  0x9d   :  { %v35_v14 = vsel %vm18_vm0, %v31_v13, 0.0 }
  0x9e   :  { %36 = vadd.xlane.f32.xlu1 %v35_v14 }
 0x127   :  { %v34_v15 = vpop.xlane.xlu1 %33 }
 0x128   :  { %v39_v16 = vmul.f32 0.032258064, %v34_v15 }
 0x12a   :  { %106 = vrsqrt.f32 %v39_v16  ;;  %vm43_vm1 = vcmp.eq.f32.partialorder %v39_v16, inf  ;;  %v46_v21 = vand.u32 2147483648, %v39_v16  ;;  %vm45_vm2 = vcmp.eq.f32.partialorder %v39_v16, 0.0 }
 0x12b   :  { %v37_v17 = vpop.xlane.xlu1 %36 }
 0x12c   :  { %v40_v18 = vmul.f32 0.032258064, %v37_v17 }
 0x12e   :  { %108 = vrsqrt.f32 %v40_v18  ;;  %vm50_vm3 = vcmp.eq.f32.partialorder %v40_v18, inf  ;;  %v53_v27 = vand.u32 2147483648, %v40_v18  ;;  %vm52_vm4 = vcmp.eq.f32.partialorder %v40_v18, 0.0 }
 0x134   :  { %v107_v19 = vpop.eup %106 }
 0x135   :  { %v42_v20 = vmul.f32 %v107_v19, %v39_v16 }
 0x137   :  { %v44_v22 = vsel %vm43_vm1, %v39_v16, %v42_v20 }
 0x138   :  { %v109_v23 = vpop.eup %108  ;;  %v47_v24 = vsel %vm45_vm2, %v46_v21, %v44_v22 }
 0x139   :  { %v55_v25 = vadd.f32 1e-06, %v47_v24  ;;  %v49_v26 = vmul.f32 %v109_v23, %v40_v18 }
 0x13b   :  { %110 = vrcp.f32 %v55_v25  ;;  %v51_v28 = vsel %vm50_vm3, %v40_v18, %v49_v26 }
 0x13c   :  { %v54_v29 = vsel %vm52_vm4, %v53_v27, %v51_v28 }
 0x13d   :  { %v56_v30 = vadd.f32 1e-06, %v54_v29 }
 0x13f   :  { %112 = vrcp.f32 %v56_v30 }
 0x145   :  { %v111_v33 = vpop.eup %110 }
 0x146   :  { %v70_v35 = vmul.f32 %v111_v33, %v68_v32 }
 0x148   :  { %v79_v37 = vadd.f32 %v97_v34, %v70_v35 }
 0x149   :  { %v113_v38 = vpop.eup %112 }
 0x14a   :  { %v100_v39 = vpack.c.bf16 %v79_v37, %v79_v37  ;;  %v71_v40 = vmul.f32 %v113_v38, %v69_v36 }
 0x14c   :  { %90 = vst.msk [vmem:[%s156_s3] sm:$0xf] %vm89_vm5, %v100_v39  ;;  %v80_v41 = vadd.f32 %v97_v34, %v71_v40 }
 0x14e   :  { %v101_v42 = vpack.c.bf16 %v80_v41, %v80_v41 }
 0x150   :  { %91 = vst.msk [vmem:[%s156_s3 + $0x4] sm:$0xf] %vm89_vm5, %v101_v42 }

// kernel: transformer_forward.60
= control target key start
LH: loop header
LB: loop body
LE: loop exit
PB: predicated region body
PF: predicated region fallthrough
CT: control target
= control target key end

     0   :  { %vm22_vm0 = vcmask 261120   ;;  %v163_v0 = vmov 0.0   ;;  %vm164_vm1 = vmmov 0   ;;  %vm127_vm2 = vcmask 257024   ;;  %s216_s1 = inlined_call_operand.vmem [shape: bf16[32,32], index: 1, kind: input, shape index: {}]   ;;  %s217_s0 = inlined_call_operand.vmem [shape: bf16[16,32], index: 0, kind: input, shape index: {}]   ;;  %s218_s3 = inlined_call_operand.vmem [shape: bf16[16,32], index: 3, kind: input, shape index: {}]   ;;  %s219_s2 = inlined_call_operand.vmem [shape: f32[1,32], index: 2, kind: input, shape index: {}]   ;;  %s220_s4 = inlined_call_operand.vmem [shape: bf16[16,32], index: 4, kind: output, shape index: {}]  }
   0x1   :  { %150 = vmatprep.subr.bf16.mxu0 %v163_v0  ;;  %v160_v1 = vld [vmem:[%s216_s1] sm:$0xff]   ;;  %154 = vmatprep.mubr.msk.bf16.mxu0 %vm164_vm1, %v163_v0  ;;  %23 = vst.msk [vmem:[#allocation2] sm:$0xff] %vm22_vm0, %v163_v0  ;;  %24 = vst.msk [vmem:[#allocation2 + $0x8] sm:$0xff] %vm22_vm0, %v163_v0  ;;  %v161_v2 = vld [vmem:[%s216_s1 + $0x8] sm:$0xff]  }
   0x2   :  { %151 = vmatpush3.bf16.msra.mxu0 %v160_v1  ;;  %v162_v3 = vld [vmem:[%s217_s0] sm:$0xff]  }
   0x3   :  { %152 = vmatprep.subr.bf16.mxu0 %v163_v0  ;;  %v144_v12 = vld [vmem:[%s218_s3] sm:$0xff]  }
   0x4   :  { %v138_v13 = vld [vmem:[%s219_s2] ss:$0 sm:$0xff]  ;;  %v145_v14 = vunpack.c.l.bf16 %v144_v12  ;;  %v146_v17 = vunpack.c.h.bf16 %v144_v12 }
   0x6   :  { %153 = vmatpush3.bf16.msra.mxu0 %v161_v2 }
   0x8   :  { %v25_v4 = vld [vmem:[#allocation2] sm:$0xff]  ;;  %v26_v6 = vld [vmem:[#allocation2 + $0x8] sm:$0xff] }
   0x9   :  { %155 = vmatmul.mubr.msk.bf16.vlgmr.msra.gmra.mrb[0].mxu0 %vm22_vm0, %v162_v3 }
  0xdc   :  { %v88_v5 = vpop.f32.mrb[0].mxu0 }
  0xdd   :  { %v95_v7 = vadd.f32 %v88_v5, %v25_v4  ;;  %v156_v8 = vpop.f32.mrb[1].mxu0 }
  0xde   :  { %v91_v9 = vpop.f32.mrb[2].mxu0 }
  0xdf   :  { %97 = vst.msk [vmem:[#allocation2] sm:$0xff] %vm22_vm0, %v95_v7  ;;  %v96_v10 = vadd.f32 %v91_v9, %v26_v6  ;;  %v157_v11 = vpop.f32.mrb[3].mxu0 }
  0xe1   :  { %98 = vst.msk [vmem:[#allocation2 + $0x8] sm:$0xff] %vm22_vm0, %v96_v10 }
  0xe6   :  { %v102_v15 = vld [vmem:[#allocation2] sm:$0xff] }
  0xe7   :  { %v111_v16 = vadd.f32 %v138_v13, %v102_v15 }
  0xe8   :  { %v103_v18 = vld [vmem:[#allocation2 + $0x8] sm:$0xff] }
  0xe9   :  { %v117_v19 = vadd.f32 %v145_v14, %v111_v16  ;;  %v112_v20 = vadd.f32 %v138_v13, %v103_v18 }
  0xeb   :  { %v141_v21 = vpack.c.bf16 %v117_v19, %v117_v19  ;;  %v118_v22 = vadd.f32 %v146_v17, %v112_v20 }
  0xed   :  { %128 = vst.msk [vmem:[%s220_s4] sm:$0xf] %vm127_vm2, %v141_v21  ;;  %v142_v23 = vpack.c.bf16 %v118_v22, %v118_v22 }
  0xef   :  { %129 = vst.msk [vmem:[%s220_s4 + $0x4] sm:$0xf] %vm127_vm2, %v142_v23 }

// kernel: transformer_forward.59
= control target key start
LH: loop header
LB: loop body
LE: loop exit
PB: predicated region body
PF: predicated region fallthrough
CT: control target
= control target key end

     0   :  { %s1276_s15 = smov 0   ;;  %s1278_s16 = smov 0   ;;  %s1461_s0 = inlined_call_operand.vmem [shape: bf16[2,4,8,8], index: 0, kind: input, shape index: {}]   ;;  %s1462_s1 = inlined_call_operand.vmem [shape: bf16[2,4,8,8], index: 1, kind: input, shape index: {}]   ;;  %s1463_s2 = inlined_call_operand.vmem [shape: bf16[2,4,8,8], index: 2, kind: input, shape index: {}]   ;;  %s1464_s3 = inlined_call_operand.vmem [shape: bf16[2,8,8], index: 3, kind: input, shape index: {}]   ;;  %s1465_s4 = inlined_call_operand.vmem [shape: bf16[2,4,8,8], index: 4, kind: output, shape index: {}]  }
   0x1   :  { %s1280_s17 = smov 0  }
   0x2 LB: > { %s33_s18 = sadd.s32 1, %s1241_s16  ;;  %p1081_p0 = scmp.ge.s32.totalorder %s1245_s17, 1  ;;  %s1245_s17 = sphi %s1280_s17, %s14_s17   ;;  %s1241_s16 = sphi %s1278_s16, %s1467_s16   ;;  %s1237_s15 = sphi %s1276_s15, %s1466_s15  }
   0x3   : > { %p35_p1 = scmp.ge.s32.totalorder %s33_s18, 2  ;;  %p237_p2 = scmp.lt.s32.totalorder %s1245_s17, 3 }
   0x5   : > { %s1469_s18 = smov (%p35_p1, %s33_s18), 0  ;;  %p238_p3 = pnand %p1081_p0, %p237_p2 }
   0x6   : > { %p295_p4 = scmp.lt.s32.totalorder (!%p238_p3), %s1237_s15, 1  ;;  %vm351_vm0 = vcmask (!%p238_p3), 64512   ;;  %v1247_v0 = vmov (!%p238_p3), 0.0   ;;  %vm1248_vm1 = vmmov (!%p238_p3), 0   ;;  %vm342_vm2 = vcmask (!%p238_p3), 7168  }
   0x7   : > { %241 = sbr.rel (%p238_p3) target bundleno = 839 (0x347), region = 36  ;;  %1121 = vmatprep.subr.bf16.mxu0 (!%p238_p3), %v1247_v0  ;;  %352 = vst.msk [vmem:[#allocation4] sm:$0xff] (!%p238_p3), %vm351_vm0, %v1247_v0  ;;  %353 = vst.msk [vmem:[#allocation4 + $0x8] sm:$0xff] (!%p238_p3), %vm351_vm0, %v1247_v0  ;;  %1127 = vmatprep.subr.bf16.mxu1 (!%p238_p3), %v1247_v0  ;;  %v1249_v13 = vmov (!%p238_p3), -inf   ;;  %v1250_v44 = vmov (!%p238_p3), 0   ;;  %vm691_vm3 = vcmask (!%p238_p3), 1043456  }
   0x8   : > { %354 = vst.msk [vmem:[#allocation4 + $0x10] sm:$0xff] (!%p238_p3), %vm351_vm0, %v1247_v0  ;;  %355 = vst.msk [vmem:[#allocation4 + $0x18] sm:$0xff] (!%p238_p3), %vm351_vm0, %v1247_v0  ;;  %1123 = vmatprep.mubr.msk.bf16.mxu0 (!%p238_p3), %vm1248_vm1, %v1247_v0  ;;  %1129 = vmatprep.mubr.msk.bf16.mxu1 (!%p238_p3), %vm1248_vm1, %v1247_v0  ;;  %vm932_vm4 = vcmask (!%p238_p3), 60416  }
   0x9   : > { %343 = vst.msk [vmem:[#allocation2] sm:$0xff] (!%p238_p3), %vm342_vm2, %v1249_v13  ;;  %344 = vst.msk [vmem:[#allocation2 + $0x8] sm:$0xff] (!%p238_p3), %vm342_vm2, %v1249_v13  ;;  %1197 = vset.pattern.permute.xlu0 (!%p238_p3), %v1250_v44  ;;  %1198 = vset.pattern.permute.xlu1 (!%p238_p3), %v1250_v44 }
   0xa   : > { %345 = vst.msk [vmem:[#allocation2 + $0x10] sm:$0xff] (!%p238_p3), %vm342_vm2, %v1249_v13  ;;  %346 = vst.msk [vmem:[#allocation2 + $0x18] sm:$0xff] (!%p238_p3), %vm342_vm2, %v1249_v13 }
   0xb   : > { %347 = vst.msk [vmem:[#allocation3] sm:$0xff] (!%p238_p3), %vm342_vm2, %v1247_v0  ;;  %348 = vst.msk [vmem:[#allocation3 + $0x8] sm:$0xff] (!%p238_p3), %vm342_vm2, %v1247_v0 }
   0xc   : > { %349 = vst.msk [vmem:[#allocation3 + $0x10] sm:$0xff] (!%p238_p3), %vm342_vm2, %v1247_v0  ;;  %350 = vst.msk [vmem:[#allocation3 + $0x18] sm:$0xff] (!%p238_p3), %vm342_vm2, %v1247_v0 }
   0xe   : > { %s1471_s15 = smov (!%p295_p4, %s1237_s15), 1 }
   0xf   : > { %s1311_s19 = sshll.u32 %s1471_s15, 4  ;;  %s1088_s26 = sshll.u32 %s1471_s15, 2 }
  0x10   : > { %s310_s22 = scalar_lea.vmem %s1462_s1, %s1311_s19  ;;  %s302_s25 = scalar_lea.vmem %s1461_s0, %s1311_s19  ;;  %v1367_v45 = vld [vmem:[#allocation2] sm:$0xff]  ;;  %v1372_v48 = vld [vmem:[#allocation2 + $0x8] sm:$0xff] }
  0x11   : > { %v360_v1 = vld [vmem:[%s310_s22] sm:$0xf]  ;;  %v361_v2 = vld [vmem:[%s310_s22 + $0x4] sm:$0xf]  ;;  %v362_v5 = vld [vmem:[%s310_s22 + $0x8] sm:$0xf]  ;;  %s328_s29 = scalar_lea.vmem %s1464_s3, %s1088_s26  ;;  %s318_s6 = scalar_lea.vmem %s1463_s2, %s1311_s19 }
  0x12   : > { %v373_v3 = vsel %vm351_vm0, %v360_v1, 0  ;;  %v419_v4 = vsel %vm351_vm0, %v361_v2, 0  ;;  %v363_v6 = vld [vmem:[%s310_s22 + $0xc] sm:$0xf]  ;;  %v356_v7 = vld [vmem:[%s302_s25] sm:$0xf]  ;;  %s336_s9 = scalar_lea.vmem %s1465_s4, %s1311_s19 }
  0x13   : > { %1122 = vmatpush3.bf16.xpose.msra.mxu0 %v373_v3  ;;  %1128 = vmatpush3.bf16.xpose.msra.mxu1 %v419_v4  ;;  %v357_v8 = vld [vmem:[%s302_s25 + $0x4] sm:$0xf]  ;;  %v465_v9 = vsel %vm351_vm0, %v362_v5, 0  ;;  %v511_v10 = vsel %vm351_vm0, %v363_v6, 0  ;;  %v358_v11 = vld [vmem:[%s302_s25 + $0x8] sm:$0xf] }
  0x14   : > { %1133 = vmatprep.subr.bf16.mxu0 %v1247_v0  ;;  %1139 = vmatprep.subr.bf16.mxu1 %v1247_v0  ;;  %v359_v12 = vld [vmem:[%s302_s25 + $0xc] sm:$0xf]  ;;  %v557_v14 = vld [vmem:[%s328_s29] sm:$0xf]  ;;  %v1382_v52 = vld [vmem:[#allocation2 + $0x10] sm:$0xff] }
  0x15   : > { %v558_v15 = vunpack.c.l.bf16 %v557_v14  ;;  %v1392_v56 = vld [vmem:[#allocation2 + $0x18] sm:$0xff]  ;;  %v364_v61 = vld [vmem:[%s318_s6] sm:$0xf]  ;;  %v365_v63 = vld [vmem:[%s318_s6 + $0x4] sm:$0xf] }
  0x16   : > { %v693_v62 = vsel %vm691_vm3, %v364_v61, 0  ;;  %v739_v1 = vsel %vm691_vm3, %v365_v63, 0  ;;  %v366_v2 = vld [vmem:[%s318_s6 + $0x8] sm:$0xf]  ;;  %v367_v4 = vld [vmem:[%s318_s6 + $0xc] sm:$0xf] }
  0x17   : > { %v785_v3 = vsel %vm691_vm3, %v366_v2, 0  ;;  %v831_v5 = vsel %vm691_vm3, %v367_v4, 0  ;;  %v629_v44 = vld [vmem:[#allocation3 + $0x10] sm:$0xff]  ;;  %v656_v61 = vld [vmem:[#allocation4] sm:$0xff] }
  0x1a   : > { %1124 = vmatmul.mubr.msk.bf16.vlgmr.msra.gmra.mrb[0].mxu0 %vm351_vm0, %v356_v7  ;;  %1130 = vmatmul.mubr.msk.bf16.vlgmr.msra.gmra.mrb[0].mxu1 %vm351_vm0, %v357_v8 }
  0x1b   : > { %1134 = vmatpush3.bf16.xpose.msra.mxu0 %v465_v9  ;;  %1140 = vmatpush3.bf16.xpose.msra.mxu1 %v511_v10 }
  0x1c   : > { %1135 = vmatprep.mubr.msk.bf16.mxu0 %vm1248_vm1, %v1247_v0  ;;  %1141 = vmatprep.mubr.msk.bf16.mxu1 %vm1248_vm1, %v1247_v0 }
  0x1d   : > { %1145 = vmatprep.subr.bf16.mxu0 %v1247_v0  ;;  %1151 = vmatprep.subr.bf16.mxu1 %v1247_v0 }
  0x22   : > { %1136 = vmatmul.mubr.msk.bf16.vlgmr.msra.gmra.mrb[4].mxu0 %vm351_vm0, %v358_v11  ;;  %1142 = vmatmul.mubr.msk.bf16.vlgmr.msra.gmra.mrb[4].mxu1 %vm351_vm0, %v359_v12 }
  0x23   : > { %1147 = vmatprep.mubr.msk.bf16.mxu0 %vm1248_vm1, %v1247_v0  ;;  %1153 = vmatprep.mubr.msk.bf16.mxu1 %vm1248_vm1, %v1247_v0 }
  0x24   : > { %1146 = vmatpush3.bf16.msra.mxu0 %v693_v62  ;;  %1152 = vmatpush3.bf16.msra.mxu1 %v739_v1  ;;  %v657_v1 = vld [vmem:[#allocation4 + $0x8] sm:$0xff] }
  0x25   : > { %1157 = vmatprep.subr.bf16.mxu0 %v1247_v0  ;;  %1163 = vmatprep.subr.bf16.mxu1 %v1247_v0 }
  0xed   : > { %v409_v16 = vpop.f32.mrb[0].mxu0  ;;  %v455_v17 = vpop.f32.mrb[0].mxu1 }
  0xee   : > { %v553_v18 = vmul.f32 0.35355338, %v409_v16  ;;  %v1125_v19 = vpop.f32.mrb[1].mxu0  ;;  %v554_v20 = vmul.f32 0.35355338, %v455_v17  ;;  %v1131_v21 = vpop.f32.mrb[1].mxu1 }
  0xef   : > { %v412_v22 = vpop.f32.mrb[2].mxu0  ;;  %v458_v23 = vpop.f32.mrb[2].mxu1 }
  0xf0   : > { %v1126_v24 = vpop.f32.mrb[3].mxu0  ;;  %v1132_v25 = vpop.f32.mrb[3].mxu1  ;;  %v1357_v26 = vadd.f32 %v558_v15, %v553_v18  ;;  %v1359_v27 = vadd.f32 %v558_v15, %v554_v20 }
  0xf2   : > { %v567_v28 = vsel %vm351_vm0, %v1357_v26, -inf  ;;  %v570_v29 = vsel %vm351_vm0, %v1359_v27, -inf }
  0xf3   : > { %568 = vmax.xlane.f32.xlu0 %v567_v28 }
  0xf5   : > { %v501_v30 = vpop.f32.mrb[4].mxu0  ;;  %v547_v31 = vpop.f32.mrb[4].mxu1 }
  0xf6   : > { %v555_v32 = vmul.f32 0.35355338, %v501_v30  ;;  %v1137_v33 = vpop.f32.mrb[5].mxu0  ;;  %v556_v34 = vmul.f32 0.35355338, %v547_v31  ;;  %v1143_v35 = vpop.f32.mrb[5].mxu1 }
  0xf7   : > { %571 = vmax.xlane.f32.xlu0 %v570_v29  ;;  %v504_v36 = vpop.f32.mrb[6].mxu0  ;;  %v550_v37 = vpop.f32.mrb[6].mxu1 }
  0xf8   : > { %v1138_v38 = vpop.f32.mrb[7].mxu0  ;;  %v1144_v39 = vpop.f32.mrb[7].mxu1  ;;  %v561_v40 = vadd.f32 %v558_v15, %v555_v32  ;;  %v562_v41 = vadd.f32 %v558_v15, %v556_v34  ;;  %v627_v37 = vld [vmem:[#allocation3] sm:$0xff] }
  0xfa   : > { %v573_v42 = vsel %vm351_vm0, %v561_v40, -inf  ;;  %v576_v43 = vsel %vm351_vm0, %v562_v41, -inf }
  0xfb   : > { %574 = vmax.xlane.f32.xlu1 %v573_v42 }
  0xff   : > { %577 = vmax.xlane.f32.xlu1 %v576_v43 }
 0x180   : > { %v569_v46 = vpop.xlane.xlu0 %568 }
 0x181   : > { %v1370_v47 = vmax.f32 %v1367_v45, %v569_v46 }
 0x183   : > { %v583_v49 = vsub.f32 %v1367_v45, %v1370_v47  ;;  %881 = vst.msk [vmem:[#allocation2] sm:$0xff] %vm342_vm2, %v1370_v47  ;;  %597 = vperm.xlu0 %1197, %v1370_v47  }
 0x184   : > { %v572_v50 = vpop.xlane.xlu0 %571 }
 0x185   : > { %v1380_v51 = vmax.f32 %v1372_v48, %v572_v50 }
 0x187   : > { %v584_v53 = vsub.f32 %v1372_v48, %v1380_v51  ;;  %882 = vst.msk [vmem:[#allocation2 + $0x8] sm:$0xff] %vm342_vm2, %v1380_v51  ;;  %602 = vperm.xlu1 %1198, %v1380_v51   ;;  %v630_v48 = vld [vmem:[#allocation3 + $0x18] sm:$0xff] }
 0x188   : > { %v575_v54 = vpop.xlane.xlu1 %574 }
 0x189   : > { %v1390_v55 = vmax.f32 %v1382_v52, %v575_v54  ;;  %v589_v28 = vmul.f32 1.442695, %v584_v53 }
 0x18b   : > { %v585_v57 = vsub.f32 %v1382_v52, %v1390_v55  ;;  %883 = vst.msk [vmem:[#allocation2 + $0x10] sm:$0xff] %vm342_vm2, %v1390_v55  ;;  %607 = vperm.xlu1 %1198, %v1390_v55  }
 0x18c   : > { %v578_v58 = vpop.xlane.xlu1 %577 }
 0x18d   : > { %v1400_v59 = vmax.f32 %v1392_v56, %v578_v58  ;;  %v591_v31 = vmul.f32 1.442695, %v585_v57 }
 0x18f   : > { %v586_v60 = vsub.f32 %v1392_v56, %v1400_v59  ;;  %884 = vst.msk [vmem:[#allocation2 + $0x18] sm:$0xff] %vm342_vm2, %v1400_v59  ;;  %612 = vperm.xlu1 %1198, %v1400_v59  }
 0x191   : > { %v593_v32 = vmul.f32 1.442695, %v586_v60 }
 0x202   : > { %v598_v6 = vpop.permute.xlu0 %597 }
 0x203   : > { %v615_v7 = vsub.f32 %v1357_v26, %v598_v6 }
 0x205   : > { %v619_v8 = vmul.f32 1.442695, %v615_v7 }
 0x206   : > { %v603_v9 = vpop.permute.xlu1 %602 }
 0x207   : > { %1199 = vpow2.f32 %v619_v8  ;;  %v616_v10 = vsub.f32 %v1359_v27, %v603_v9 }
 0x209   : > { %v621_v11 = vmul.f32 1.442695, %v616_v10  ;;  %v658_v10 = vld [vmem:[#allocation4 + $0x10] sm:$0xff] }
 0x20a   : > { %v608_v12 = vpop.permute.xlu1 %607 }
 0x20b   : > { %1201 = vpow2.f32 %v621_v11  ;;  %v617_v13 = vsub.f32 %v561_v40, %v608_v12  ;;  %v628_v40 = vld [vmem:[#allocation3 + $0x8] sm:$0xff] }
 0x20d   : > { %v623_v14 = vmul.f32 1.442695, %v617_v13 }
 0x20e   : > { %v613_v15 = vpop.permute.xlu1 %612 }
 0x20f   : > { %1203 = vpow2.f32 %v623_v14  ;;  %v618_v16 = vsub.f32 %v562_v41, %v613_v15 }
 0x211   : > { %v1200_v17 = vpop.eup %1199  ;;  %v625_v18 = vmul.f32 1.442695, %v618_v16 }
 0x212   : > { %v635_v19 = vsel %vm351_vm0, %v1200_v17, 0.0  ;;  %v684_v20 = vpack.c.bf16 %v1200_v17, %v1200_v17  ;;  %v659_v17 = vld [vmem:[#allocation4 + $0x18] sm:$0xff] }
 0x213   : > { %1205 = vpow2.f32 %v625_v18  ;;  %636 = vadd.xlane.f32.xlu1 %v635_v19 }
 0x214   : > { %1148 = vmatmul.mubr.msk.bf16.vlgmr.msra.gmra.mrb[8].mxu0 %vm351_vm0, %v684_v20  ;;  %1207 = vpow2.f32 %v589_v28 }
 0x215   : > { %v1202_v21 = vpop.eup %1201  ;;  %1158 = vmatpush3.bf16.msra.mxu0 %v785_v3  ;;  %1159 = vmatprep.mubr.msk.bf16.mxu0 %vm1248_vm1, %v1247_v0 }
 0x216   : > { %v638_v22 = vsel %vm351_vm0, %v1202_v21, 0.0  ;;  %v685_v23 = vpack.c.bf16 %v1202_v21, %v1202_v21 }
 0x217   : > { %639 = vadd.xlane.f32.xlu0 %v638_v22 }
 0x218   : > { %1154 = vmatmul.mubr.msk.bf16.vlgmr.msra.gmra.mrb[8].mxu1 %vm351_vm0, %v685_v23 }
 0x219   : > { %v1204_v24 = vpop.eup %1203  ;;  %1164 = vmatpush3.bf16.msra.mxu1 %v831_v5  ;;  %1165 = vmatprep.mubr.msk.bf16.mxu1 %vm1248_vm1, %v1247_v0  ;;  %v587_v0 = vmul.f32 1.442695, %v583_v49 }
 0x21a   : > { %v641_v25 = vsel %vm351_vm0, %v1204_v24, 0.0  ;;  %v686_v26 = vpack.c.bf16 %v1204_v24, %v1204_v24 }
 0x21b   : > { %642 = vadd.xlane.f32.xlu1 %v641_v25  ;;  %1209 = vpow2.f32 %v587_v0 }
 0x21c   : > { %1160 = vmatmul.mubr.msk.bf16.vlgmr.msra.gmra.mrb[12].mxu0 %vm351_vm0, %v686_v26  ;;  %1211 = vpow2.f32 %v591_v31 }
 0x21d   : > { %v1206_v27 = vpop.eup %1205  ;;  %1213 = vpow2.f32 %v593_v32 }
 0x21e   : > { %v644_v29 = vsel %vm351_vm0, %v1206_v27, 0.0  ;;  %v687_v30 = vpack.c.bf16 %v1206_v27, %v1206_v27  ;;  %v1208_v33 = vpop.eup %1207 }
 0x21f   : > { %645 = vadd.xlane.f32.xlu1 %v644_v29  ;;  %v632_v42 = vmul.f32 %v1208_v33, %v628_v40 }
 0x220   : > { %1166 = vmatmul.mubr.msk.bf16.vlgmr.msra.gmra.mrb[12].mxu1 %vm351_vm0, %v687_v30 }
 0x225   : > { %v1210_v34 = vpop.eup %1209 }
 0x226   : > { %v1212_v35 = vpop.eup %1211  ;;  %v631_v38 = vmul.f32 %v1210_v34, %v627_v37 }
 0x227   : > { %v1214_v36 = vpop.eup %1213  ;;  %v633_v46 = vmul.f32 %v1212_v35, %v629_v44 }
 0x228   : > { %v634_v51 = vmul.f32 %v1214_v36, %v630_v48 }
 0x22d   : > { %667 = vperm.xlu0 %1197, %v1208_v33  }
 0x230   : > { %662 = vperm.xlu1 %1198, %v1210_v34  }
 0x234   : > { %672 = vperm.xlu1 %1198, %v1212_v35  }
 0x238   : > { %677 = vperm.xlu1 %1198, %v1214_v36  }
 0x2a0   : > { %v637_v39 = vpop.xlane.xlu1 %636 }
 0x2a1   : > { %v647_v41 = vadd.f32 %v637_v39, %v631_v38 }
 0x2a3   : > { %652 = vst.msk [vmem:[#allocation3] sm:$0xff] %vm342_vm2, %v647_v41 }
 0x2a4   : > { %v640_v43 = vpop.xlane.xlu0 %639 }
 0x2a5   : > { %v648_v45 = vadd.f32 %v640_v43, %v632_v42 }
 0x2a7   : > { %653 = vst.msk [vmem:[#allocation3 + $0x8] sm:$0xff] %vm342_vm2, %v648_v45 }
 0x2a8   : > { %v643_v47 = vpop.xlane.xlu1 %642 }
 0x2a9   : > { %v649_v49 = vadd.f32 %v643_v47, %v633_v46 }
 0x2aa   : > { %v892_v50 = vld [vmem:[#allocation3] sm:$0xff] }
 0x2ab   : > { %654 = vst.msk [vmem:[#allocation3 + $0x10] sm:$0xff] %vm342_vm2, %v649_v49  ;;  %1215 = vrcp.f32 %v892_v50 }
 0x2ac   : > { %v646_v52 = vpop.xlane.xlu1 %645  ;;  %v668_v2 = vpop.permute.xlu0 %667 }
 0x2ad   : > { %v650_v53 = vadd.f32 %v646_v52, %v634_v51  ;;  %v681_v8 = vmul.f32 %v668_v2, %v657_v1 }
 0x2ae   : > { %v893_v54 = vld [vmem:[#allocation3 + $0x8] sm:$0xff] }
 0x2af   : > { %655 = vst.msk [vmem:[#allocation3 + $0x18] sm:$0xff] %vm342_vm2, %v650_v53  ;;  %1217 = vrcp.f32 %v893_v54 }
 0x2b0   : > { %v663_v62 = vpop.permute.xlu1 %662 }
 0x2b1   : > { %v680_v63 = vmul.f32 %v663_v62, %v656_v61 }
 0x2b2   : > { %v894_v55 = vld [vmem:[#allocation3 + $0x10] sm:$0xff] }
 0x2b3   : > { %1219 = vrcp.f32 %v894_v55 }
 0x2b4   : > { %v673_v6 = vpop.permute.xlu1 %672 }
 0x2b5   : > { %v1216_v56 = vpop.eup %1215  ;;  %v682_v15 = vmul.f32 %v673_v6, %v658_v10 }
 0x2b6   : > { %906 = vperm.xlu1 %1198, %v1216_v56   ;;  %v895_v57 = vld [vmem:[#allocation3 + $0x18] sm:$0xff] }
 0x2b7   : > { %1221 = vrcp.f32 %v895_v57 }
 0x2b8   : > { %v678_v18 = vpop.permute.xlu1 %677 }
 0x2b9   : > { %v1218_v58 = vpop.eup %1217  ;;  %v683_v23 = vmul.f32 %v678_v18, %v659_v17 }
 0x2ba   : > { %911 = vperm.xlu0 %1197, %v1218_v58  }
 0x2bd   : > { %v1220_v59 = vpop.eup %1219 }
 0x2be   : > { %916 = vperm.xlu1 %1198, %v1220_v59  }
 0x2c1   : > { %v1222_v60 = vpop.eup %1221 }
 0x2c2   : > { %921 = vperm.xlu0 %1197, %v1222_v60  }
 0x2e7   : > { %v729_v3 = vpop.f32.mrb[8].mxu0 }
 0x2e8   : > { %v873_v4 = vadd.f32 %v729_v3, %v680_v63  ;;  %v1149_v5 = vpop.f32.mrb[9].mxu0 }
 0x2e9   : > { %v732_v7 = vpop.f32.mrb[10].mxu0 }
 0x2ea   : > { %877 = vst.msk [vmem:[#allocation4] sm:$0xff] %vm351_vm0, %v873_v4  ;;  %v1150_v9 = vpop.f32.mrb[11].mxu0 }
 0x2eb   : > { %v775_v11 = vpop.f32.mrb[8].mxu1 }
 0x2ec   : > { %v874_v12 = vadd.f32 %v775_v11, %v681_v8  ;;  %v1155_v13 = vpop.f32.mrb[9].mxu1 }
 0x2ed   : > { %v778_v14 = vpop.f32.mrb[10].mxu1 }
 0x2ee   : > { %878 = vst.msk [vmem:[#allocation4 + $0x8] sm:$0xff] %vm351_vm0, %v874_v12  ;;  %v1156_v16 = vpop.f32.mrb[11].mxu1 }
 0x2ef   : > { %v821_v19 = vpop.f32.mrb[12].mxu0 }
 0x2f0   : > { %v875_v20 = vadd.f32 %v821_v19, %v682_v15  ;;  %v1161_v21 = vpop.f32.mrb[13].mxu0 }
 0x2f1   : > { %v824_v22 = vpop.f32.mrb[14].mxu0  ;;  %v888_v0 = vld [vmem:[#allocation4] sm:$0xff] }
 0x2f2   : > { %879 = vst.msk [vmem:[#allocation4 + $0x10] sm:$0xff] %vm351_vm0, %v875_v20  ;;  %v1162_v24 = vpop.f32.mrb[15].mxu0 }
 0x2f3   : > { %v867_v25 = vpop.f32.mrb[12].mxu1 }
 0x2f4   : > { %v876_v26 = vadd.f32 %v867_v25, %v683_v23  ;;  %v1167_v27 = vpop.f32.mrb[13].mxu1 }
 0x2f5   : > { %v870_v28 = vpop.f32.mrb[14].mxu1  ;;  %v889_v33 = vld [vmem:[#allocation4 + $0x8] sm:$0xff] }
 0x2f6   : > { %880 = vst.msk [vmem:[#allocation4 + $0x18] sm:$0xff] %vm351_vm0, %v876_v26  ;;  %v1168_v29 = vpop.f32.mrb[15].mxu1 }
 0x2f9   : > { %v890_v38 = vld [vmem:[#allocation4 + $0x10] sm:$0xff] }
 0x2fd   : > { %v891_v42 = vld [vmem:[#allocation4 + $0x18] sm:$0xff] }
 0x335   : > { %v907_v30 = vpop.permute.xlu1 %906 }
 0x336   : > { %v924_v31 = vmul.f32 %v907_v30, %v888_v0 }
 0x338   : > { %v928_v32 = vpack.c.bf16 %v924_v31, %v924_v31 }
 0x339   : > { %v912_v34 = vpop.permute.xlu0 %911 }
 0x33a   : > { %933 = vst.msk [vmem:[%s336_s9] sm:$0xf] %vm932_vm4, %v928_v32  ;;  %v925_v35 = vmul.f32 %v912_v34, %v889_v33 }
 0x33c   : > { %v929_v36 = vpack.c.bf16 %v925_v35, %v925_v35 }
 0x33d   : > { %v917_v37 = vpop.permute.xlu1 %916 }
 0x33e   : > { %934 = vst.msk [vmem:[%s336_s9 + $0x4] sm:$0xf] %vm932_vm4, %v929_v36  ;;  %v926_v39 = vmul.f32 %v917_v37, %v890_v38 }
 0x340   : > { %v930_v40 = vpack.c.bf16 %v926_v39, %v926_v39 }
 0x341   : > { %v922_v41 = vpop.permute.xlu0 %921 }
 0x342   : > { %935 = vst.msk [vmem:[%s336_s9 + $0x8] sm:$0xf] %vm932_vm4, %v930_v40  ;;  %v927_v43 = vmul.f32 %v922_v41, %v891_v42 }
 0x344   : > { %v931_v44 = vpack.c.bf16 %v927_v43, %v927_v43 }
 0x346   : > { %936 = vst.msk [vmem:[%s336_s9 + $0xc] sm:$0xf] %vm932_vm4, %v931_v44 }
 0x347 PF: > { %s14_s17 = sadd.s32 1, %s1245_s17   ;;  %s1466_s15 = smov %s1241_s16 }
 0x348   : > { %p11_p5 = scmp.ge.s32.totalorder %s14_s17, 4   ;;  %s1467_s16 = smov %s1469_s18 }
 0x34a   :  { %13 = sbr.rel (!%p11_p5) target bundleno = 2 (0x2), region = 83 }

// kernel: transformer_forward.62
= control target key start
LH: loop header
LB: loop body
LE: loop exit
PB: predicated region body
PF: predicated region fallthrough
CT: control target
= control target key end

     0   :  { %vm19_vm0 = vcmask 261120   ;;  %v150_v0 = vmov 0.0   ;;  %vm151_vm1 = vmmov 0   ;;  %vm118_vm2 = vcmask 257024   ;;  %s195_s1 = inlined_call_operand.vmem [shape: bf16[32,32], index: 1, kind: input, shape index: {}]   ;;  %s196_s0 = inlined_call_operand.vmem [shape: bf16[16,32], index: 0, kind: input, shape index: {}]   ;;  %s197_s2 = inlined_call_operand.vmem [shape: f32[1,32], index: 2, kind: input, shape index: {}]   ;;  %s198_s3 = inlined_call_operand.vmem [shape: bf16[16,32], index: 3, kind: output, shape index: {}]  }
   0x1   :  { %137 = vmatprep.subr.bf16.mxu0 %v150_v0  ;;  %v147_v1 = vld [vmem:[%s195_s1] sm:$0xff]   ;;  %141 = vmatprep.mubr.msk.bf16.mxu0 %vm151_vm1, %v150_v0  ;;  %20 = vst.msk [vmem:[#allocation2] sm:$0xff] %vm19_vm0, %v150_v0  ;;  %21 = vst.msk [vmem:[#allocation2 + $0x8] sm:$0xff] %vm19_vm0, %v150_v0  ;;  %v148_v2 = vld [vmem:[%s195_s1 + $0x8] sm:$0xff]  }
   0x2   :  { %138 = vmatpush3.bf16.msra.mxu0 %v147_v1  ;;  %v149_v3 = vld [vmem:[%s196_s0] sm:$0xff]  }
   0x3   :  { %139 = vmatprep.subr.bf16.mxu0 %v150_v0  ;;  %v129_v12 = vld [vmem:[%s197_s2] ss:$0 sm:$0xff] }
   0x6   :  { %140 = vmatpush3.bf16.msra.mxu0 %v148_v2 }
   0x8   :  { %v22_v4 = vld [vmem:[#allocation2] sm:$0xff]  ;;  %v23_v6 = vld [vmem:[#allocation2 + $0x8] sm:$0xff] }
   0x9   :  { %142 = vmatmul.mubr.msk.bf16.vlgmr.msra.gmra.mrb[0].mxu0 %vm19_vm0, %v149_v3 }
  0xdc   :  { %v85_v5 = vpop.f32.mrb[0].mxu0 }
  0xdd   :  { %v92_v7 = vadd.f32 %v85_v5, %v22_v4  ;;  %v143_v8 = vpop.f32.mrb[1].mxu0 }
  0xde   :  { %v88_v9 = vpop.f32.mrb[2].mxu0 }
  0xdf   :  { %94 = vst.msk [vmem:[#allocation2] sm:$0xff] %vm19_vm0, %v92_v7  ;;  %v93_v10 = vadd.f32 %v88_v9, %v23_v6  ;;  %v144_v11 = vpop.f32.mrb[3].mxu0 }
  0xe1   :  { %95 = vst.msk [vmem:[#allocation2 + $0x8] sm:$0xff] %vm19_vm0, %v93_v10 }
  0xe6   :  { %v99_v13 = vld [vmem:[#allocation2] sm:$0xff] }
  0xe7   :  { %v108_v14 = vadd.f32 %v129_v12, %v99_v13 }
  0xe8   :  { %v100_v15 = vld [vmem:[#allocation2 + $0x8] sm:$0xff] }
  0xe9   :  { %v132_v16 = vpack.c.bf16 %v108_v14, %v108_v14  ;;  %v109_v17 = vadd.f32 %v129_v12, %v100_v15 }
  0xeb   :  { %119 = vst.msk [vmem:[%s198_s3] sm:$0xf] %vm118_vm2, %v132_v16  ;;  %v133_v18 = vpack.c.bf16 %v109_v17, %v109_v17 }
  0xed   :  { %120 = vst.msk [vmem:[%s198_s3 + $0x4] sm:$0xf] %vm118_vm2, %v133_v18 }

// kernel: transformer_forward.47
= control target key start
LH: loop header
LB: loop body
LE: loop exit
PB: predicated region body
PF: predicated region fallthrough
CT: control target
= control target key end

     0   :  { %vm19_vm0 = vcmask 523264   ;;  %v153_v0 = vmov 0.0   ;;  %vm154_vm1 = vmmov 0   ;;  %vm47_vm2 = vcmask 261120   ;;  %s197_s1 = inlined_call_operand.vmem [shape: bf16[32,64], index: 1, kind: input, shape index: {}]   ;;  %s198_s0 = inlined_call_operand.vmem [shape: bf16[16,32], index: 0, kind: input, shape index: {}]   ;;  %s199_s2 = inlined_call_operand.vmem [shape: f32[1,64], index: 2, kind: input, shape index: {}]   ;;  %s200_s3 = inlined_call_operand.vmem [shape: bf16[16,64], index: 3, kind: output, shape index: {}]  }
   0x1   :  { %140 = vmatprep.subr.bf16.mxu0 %v153_v0  ;;  %v150_v1 = vld [vmem:[%s197_s1] sm:$0xff]   ;;  %144 = vmatprep.mubr.msk.bf16.mxu0 %vm154_vm1, %v153_v0  ;;  %20 = vst.msk [vmem:[#allocation2] sm:$0xff] %vm19_vm0, %v153_v0  ;;  %21 = vst.msk [vmem:[#allocation2 + $0x8] sm:$0xff] %vm19_vm0, %v153_v0  ;;  %v151_v2 = vld [vmem:[%s197_s1 + $0x8] sm:$0xff]   ;;  %vm121_vm3 = vcmask 519168  }
   0x2   :  { %141 = vmatpush3.bf16.msra.mxu0 %v150_v1  ;;  %v152_v3 = vld [vmem:[%s198_s0] sm:$0xff]  }
   0x3   :  { %142 = vmatprep.subr.bf16.mxu0 %v153_v0  ;;  %v132_v12 = vld [vmem:[%s199_s2] ss:$0 sm:$0xff] }
   0x6   :  { %143 = vmatpush3.bf16.msra.mxu0 %v151_v2 }
   0x8   :  { %v22_v4 = vld [vmem:[#allocation2] sm:$0xff]  ;;  %v23_v6 = vld [vmem:[#allocation2 + $0x8] sm:$0xff] }
   0x9   :  { %145 = vmatmul.mubr.msk.bf16.vlgmr.msra.gmra.mrb[0].mxu0 %vm47_vm2, %v152_v3 }
  0xdc   :  { %v85_v5 = vpop.f32.mrb[0].mxu0 }
  0xdd   :  { %v92_v7 = vadd.f32 %v85_v5, %v22_v4  ;;  %v146_v8 = vpop.f32.mrb[1].mxu0 }
  0xde   :  { %v88_v9 = vpop.f32.mrb[2].mxu0 }
  0xdf   :  { %95 = vst.msk [vmem:[#allocation2] sm:$0xff] %vm19_vm0, %v92_v7  ;;  %v93_v10 = vadd.f32 %v88_v9, %v23_v6  ;;  %v147_v11 = vpop.f32.mrb[3].mxu0 }
  0xe1   :  { %96 = vst.msk [vmem:[#allocation2 + $0x8] sm:$0xff] %vm19_vm0, %v93_v10 }
  0xe6   :  { %v100_v13 = vld [vmem:[#allocation2] sm:$0xff] }
  0xe7   :  { %v109_v14 = vadd.f32 %v132_v12, %v100_v13 }
  0xe8   :  { %v101_v15 = vld [vmem:[#allocation2 + $0x8] sm:$0xff] }
  0xe9   :  { %v111_v16 = vmax.f32 %v109_v14, 0.0  ;;  %v110_v17 = vadd.f32 %v132_v12, %v101_v15 }
  0xeb   :  { %v135_v18 = vpack.c.bf16 %v111_v16, %v111_v16  ;;  %v112_v19 = vmax.f32 %v110_v17, 0.0 }
  0xed   :  { %122 = vst.msk [vmem:[%s200_s3] sm:$0xf] %vm121_vm3, %v135_v18  ;;  %v136_v20 = vpack.c.bf16 %v112_v19, %v112_v19 }
  0xef   :  { %123 = vst.msk [vmem:[%s200_s3 + $0x4] sm:$0xf] %vm121_vm3, %v136_v20 }

// kernel: transformer_forward.63
= control target key start
LH: loop header
LB: loop body
LE: loop exit
PB: predicated region body
PF: predicated region fallthrough
CT: control target
= control target key end

     0   :  { %vm19_vm0 = vcmask 523264   ;;  %v151_v0 = vmov 0.0   ;;  %vm152_vm1 = vmmov 0   ;;  %vm47_vm2 = vcmask 261120   ;;  %s195_s1 = inlined_call_operand.vmem [shape: bf16[32,64], index: 1, kind: input, shape index: {}]   ;;  %s196_s0 = inlined_call_operand.vmem [shape: bf16[16,32], index: 0, kind: input, shape index: {}]   ;;  %s197_s2 = inlined_call_operand.vmem [shape: f32[1,64], index: 2, kind: input, shape index: {}]   ;;  %s198_s3 = inlined_call_operand.vmem [shape: bf16[16,64], index: 3, kind: output, shape index: {}]  }
   0x1   :  { %138 = vmatprep.subr.bf16.mxu0 %v151_v0  ;;  %v148_v1 = vld [vmem:[%s195_s1] sm:$0xff]   ;;  %142 = vmatprep.mubr.msk.bf16.mxu0 %vm152_vm1, %v151_v0  ;;  %20 = vst.msk [vmem:[#allocation2] sm:$0xff] %vm19_vm0, %v151_v0  ;;  %21 = vst.msk [vmem:[#allocation2 + $0x8] sm:$0xff] %vm19_vm0, %v151_v0  ;;  %v149_v2 = vld [vmem:[%s195_s1 + $0x8] sm:$0xff]   ;;  %vm119_vm3 = vcmask 519168  }
   0x2   :  { %139 = vmatpush3.bf16.msra.mxu0 %v148_v1  ;;  %v150_v3 = vld [vmem:[%s196_s0] sm:$0xff]  }
   0x3   :  { %140 = vmatprep.subr.bf16.mxu0 %v151_v0  ;;  %v130_v12 = vld [vmem:[%s197_s2] ss:$0 sm:$0xff] }
   0x6   :  { %141 = vmatpush3.bf16.msra.mxu0 %v149_v2 }
   0x8   :  { %v22_v4 = vld [vmem:[#allocation2] sm:$0xff]  ;;  %v23_v6 = vld [vmem:[#allocation2 + $0x8] sm:$0xff] }
   0x9   :  { %143 = vmatmul.mubr.msk.bf16.vlgmr.msra.gmra.mrb[0].mxu0 %vm47_vm2, %v150_v3 }
  0xdc   :  { %v85_v5 = vpop.f32.mrb[0].mxu0 }
  0xdd   :  { %v92_v7 = vadd.f32 %v85_v5, %v22_v4  ;;  %v144_v8 = vpop.f32.mrb[1].mxu0 }
  0xde   :  { %v88_v9 = vpop.f32.mrb[2].mxu0 }
  0xdf   :  { %95 = vst.msk [vmem:[#allocation2] sm:$0xff] %vm19_vm0, %v92_v7  ;;  %v93_v10 = vadd.f32 %v88_v9, %v23_v6  ;;  %v145_v11 = vpop.f32.mrb[3].mxu0 }
  0xe1   :  { %96 = vst.msk [vmem:[#allocation2 + $0x8] sm:$0xff] %vm19_vm0, %v93_v10 }
  0xe6   :  { %v100_v13 = vld [vmem:[#allocation2] sm:$0xff] }
  0xe7   :  { %v109_v14 = vadd.f32 %v130_v12, %v100_v13 }
  0xe8   :  { %v101_v15 = vld [vmem:[#allocation2 + $0x8] sm:$0xff] }
  0xe9   :  { %v133_v16 = vpack.c.bf16 %v109_v14, %v109_v14  ;;  %v110_v17 = vadd.f32 %v130_v12, %v101_v15 }
  0xeb   :  { %120 = vst.msk [vmem:[%s198_s3] sm:$0xf] %vm119_vm3, %v133_v16  ;;  %v134_v18 = vpack.c.bf16 %v110_v17, %v110_v17 }
  0xed   :  { %121 = vst.msk [vmem:[%s198_s3 + $0x4] sm:$0xf] %vm119_vm3, %v134_v18 }

// kernel: transformer_forward.48
= control target key start
LH: loop header
LB: loop body
LE: loop exit
PB: predicated region body
PF: predicated region fallthrough
CT: control target
= control target key end

     0   :  { %vm22_vm0 = vcmask 261120   ;;  %v190_v0 = vmov 0.0   ;;  %vm191_vm1 = vmmov 0   ;;  %vm66_vm2 = vcmask 523264   ;;  %s248_s1 = inlined_call_operand.vmem [shape: bf16[64,32], index: 1, kind: input, shape index: {}]   ;;  %s249_s0 = inlined_call_operand.vmem [shape: bf16[16,64], index: 0, kind: input, shape index: {}]   ;;  %s250_s3 = inlined_call_operand.vmem [shape: bf16[16,32], index: 3, kind: input, shape index: {}]   ;;  %s251_s2 = inlined_call_operand.vmem [shape: f32[1,32], index: 2, kind: input, shape index: {}]   ;;  %s252_s4 = inlined_call_operand.vmem [shape: bf16[16,32], index: 4, kind: output, shape index: {}]  }
   0x1   :  { %171 = vmatprep.subr.bf16.mxu0 %v190_v0  ;;  %v185_v1 = vld [vmem:[%s248_s1] sm:$0xff]   ;;  %179 = vmatprep.mubr.msk.bf16.mxu0 %vm191_vm1, %v190_v0  ;;  %23 = vst.msk [vmem:[#allocation2] sm:$0xff] %vm22_vm0, %v190_v0  ;;  %24 = vst.msk [vmem:[#allocation2 + $0x8] sm:$0xff] %vm22_vm0, %v190_v0  ;;  %v186_v2 = vld [vmem:[%s248_s1 + $0x8] sm:$0xff]   ;;  %vm144_vm3 = vcmask 257024  }
   0x2   :  { %172 = vmatpush3.bf16.msra.mxu0 %v185_v1  ;;  %v187_v3 = vld [vmem:[%s248_s1 + $0x10] sm:$0xff]   ;;  %v188_v4 = vld [vmem:[%s248_s1 + $0x18] sm:$0xff]   ;;  %v189_v5 = vld [vmem:[%s249_s0] sm:$0xff]  }
   0x3   :  { %173 = vmatprep.subr.bf16.mxu0 %v190_v0  ;;  %v163_v14 = vld [vmem:[%s250_s3] sm:$0xff]  }
   0x4   :  { %v157_v15 = vld [vmem:[%s251_s2] ss:$0 sm:$0xff]  ;;  %v164_v16 = vunpack.c.l.bf16 %v163_v14  ;;  %v165_v19 = vunpack.c.h.bf16 %v163_v14 }
   0x6   :  { %174 = vmatpush3.bf16.msra.mxu0 %v186_v2 }
   0x7   :  { %175 = vmatprep.subr.bf16.mxu0 %v190_v0 }
   0x8   :  { %v25_v6 = vld [vmem:[#allocation2] sm:$0xff]  ;;  %v26_v8 = vld [vmem:[#allocation2 + $0x8] sm:$0xff] }
   0xa   :  { %176 = vmatpush3.bf16.msra.mxu0 %v187_v3 }
   0xb   :  { %177 = vmatprep.subr.bf16.mxu0 %v190_v0 }
   0xe   :  { %178 = vmatpush3.bf16.msra.mxu0 %v188_v4 }
  0x11   :  { %180 = vmatmul.mubr.msk.bf16.vlgmr.msra.gmra.mrb[0].mxu0 %vm66_vm2, %v189_v5 }
  0xe4   :  { %v104_v7 = vpop.f32.mrb[0].mxu0 }
  0xe5   :  { %v111_v9 = vadd.f32 %v104_v7, %v25_v6  ;;  %v181_v10 = vpop.f32.mrb[1].mxu0 }
  0xe6   :  { %v107_v11 = vpop.f32.mrb[2].mxu0 }
  0xe7   :  { %114 = vst.msk [vmem:[#allocation2] sm:$0xff] %vm22_vm0, %v111_v9  ;;  %v112_v12 = vadd.f32 %v107_v11, %v26_v8  ;;  %v182_v13 = vpop.f32.mrb[3].mxu0 }
  0xe9   :  { %115 = vst.msk [vmem:[#allocation2 + $0x8] sm:$0xff] %vm22_vm0, %v112_v12 }
  0xee   :  { %v119_v17 = vld [vmem:[#allocation2] sm:$0xff] }
  0xef   :  { %v128_v18 = vadd.f32 %v157_v15, %v119_v17 }
  0xf0   :  { %v120_v20 = vld [vmem:[#allocation2 + $0x8] sm:$0xff] }
  0xf1   :  { %v134_v21 = vadd.f32 %v164_v16, %v128_v18  ;;  %v129_v22 = vadd.f32 %v157_v15, %v120_v20 }
  0xf3   :  { %v160_v23 = vpack.c.bf16 %v134_v21, %v134_v21  ;;  %v135_v24 = vadd.f32 %v165_v19, %v129_v22 }
  0xf5   :  { %145 = vst.msk [vmem:[%s252_s4] sm:$0xf] %vm144_vm3, %v160_v23  ;;  %v161_v25 = vpack.c.bf16 %v135_v24, %v135_v24 }
  0xf7   :  { %146 = vst.msk [vmem:[%s252_s4 + $0x4] sm:$0xf] %vm144_vm3, %v161_v25 }

// kernel: transformer_forward.83
= control target key start
LH: loop header
LB: loop body
LE: loop exit
PB: predicated region body
PF: predicated region fallthrough
CT: control target
= control target key end

     0   :  { %s119_s0 = inlined_call_operand.vmem [shape: f32[16,16], index: 0, kind: input, shape index: {}]   ;;  %s120_s1 = inlined_call_operand.vmem [shape: f32[16,1], index: 1, kind: input, shape index: {}]   ;;  %s121_s2 = inlined_call_operand.hbm [shape: f32[16,16], index: 2, kind: output, shape index: {}]  }
   0x1   :  { %v14_v0 = vld [vmem:[%s120_s1] sm:$0xff] }
   0x2   :  { %7 = vsyncpa [#allocation3], 0  ;;  %v76_v1 = vmov 0   ;;  %v15_v2 = vld [vmem:[%s120_s1 + $0x8] sm:$0xff]  ;;  %v12_v3 = vld [vmem:[%s119_s0] sm:$0xff]  ;;  %vm28_vm0 = vcmask 130048  }
   0x3   :  { %51 = vset.pattern.permute.xlu0 %v76_v1  ;;  %s77_s15 = smov [#allocation2]   ;;  %v13_v6 = vld [vmem:[%s119_s0 + $0x8] sm:$0xff] }
   0x4   :  { %18 = vperm.xlu0 %51, %v14_v0   ;;  %s36_s16 = sshll.u32 %s77_s15, 4  ;;  %s37_s16 = int_to_ptr.vmem [resolvable:$true] %s36_s16 }
   0x5   :  { %s52_s1 = scalar_lea.vmem %s37_s16, 256  ;;  %p57_p1 = scmp.lt.s32.totalorder %s37_s16, %s37_s16 }
   0x6   :  { %p53_p0 = scmp.ne.s32.totalorder %s37_s16, %s52_s1  ;;  %p58_p2 = scmp.lt.s32.totalorder %s52_s1, %s52_s1 }
   0x8   :  { %23 = vperm.xlu0 %51, %v15_v2   ;;  %p59_p3 = por %p58_p2, %p57_p1 }
   0xa   :  { %p60_p4 = pnand %p59_p3, %p53_p0 }
  0x83   :  { %v19_v4 = vpop.permute.xlu0 %18 }
  0x84   :  { %v26_v5 = vsub.f32 %v12_v3, %v19_v4 }
  0x86   :  { %29 = vst.msk [vmem:[#allocation2] sm:$0xff] %vm28_vm0, %v26_v5 }
  0x87   :  { %v24_v7 = vpop.permute.xlu0 %23 }
  0x88   :  { %v27_v8 = vsub.f32 %v13_v6, %v24_v7 }
  0x8a   :  { %30 = vst.msk [vmem:[#allocation2 + $0x8] sm:$0xff] %vm28_vm0, %v27_v8 }
  0x8b   :  { %63 = shalt.err (!%p60_p4)
}
  0x8c   :  { %s64_s21 = scalar_lea.hbm %s121_s2, 256 }
  0x8d   :  { %p65_p5 = scmp.ne.s32.totalorder %s121_s2, %s64_s21  ;;  %p68_p6 = scmp.lt.u32.totalorder %s64_s21, %s121_s2 }
  0x8f   :  { %p70_p7 = pnand %p68_p6, %p65_p5 }
  0x91   :  { %73 = shalt.err (!%p70_p7)
}
  0x92   :  { %s78_s25 = smov 128   ;;  %s79_s26 = smov 8  }
  0x93   :  { %42 = dma.vmem_to_hbm [thread:$0]  %s37_s16, 256, %s121_s2, [#allocation3], %s78_s25, %s78_s25, %s79_s26  }
  0x94   :  { %74 = dma.done.wait [#allocation3], 256  }
  0x95   :  { %75 = vsyncadd [#allocation3], 4294967040 }
  0x96   :  { %46 = vsyncpa [#allocation3], 1 }

// kernel: transformer_forward.82
= control target key start
LH: loop header
LB: loop body
LE: loop exit
PB: predicated region body
PF: predicated region fallthrough
CT: control target
= control target key end

     0   :  { %vm21_vm0 = vcmask 130048   ;;  %v234_v0 = vmov 0.0   ;;  %vm235_vm1 = vmmov 0   ;;  %vm59_vm2 = vcmask 261120   ;;  %s307_s1 = inlined_call_operand.vmem [shape: bf16[32,16], index: 1, kind: input, shape index: {}]   ;;  %s308_s0 = inlined_call_operand.vmem [shape: bf16[16,32], index: 0, kind: input, shape index: {}]   ;;  %s309_s2 = inlined_call_operand.vmem [shape: f32[1,16], index: 2, kind: input, shape index: {}]   ;;  %s310_s3 = inlined_call_operand.vmem [shape: f32[16,16], index: 3, kind: output, shape index: {0}]   ;;  %s311_s4 = inlined_call_operand.vmem [shape: f32[16,1], index: 4, kind: output, shape index: {1}]  }
   0x1   :  { %205 = vmatprep.subr.bf16.mxu0 %v234_v0  ;;  %v219_v1 = vld [vmem:[%s307_s1] sm:$0xff]   ;;  %209 = vmatprep.mubr.msk.bf16.mxu0 %vm235_vm1, %v234_v0  ;;  %22 = vst.msk [vmem:[#allocation2] sm:$0xff] %vm21_vm0, %v234_v0  ;;  %23 = vst.msk [vmem:[#allocation2 + $0x8] sm:$0xff] %vm21_vm0, %v234_v0  ;;  %v220_v2 = vld [vmem:[%s307_s1 + $0x8] sm:$0xff]   ;;  %vm29_vm3 = vcmask 7168   ;;  %v236_v4 = vmov -inf  }
   0x2   :  { %206 = vmatpush3.bf16.msra.mxu0 %v219_v1  ;;  %v221_v3 = vld [vmem:[%s308_s0] sm:$0xff]   ;;  %30 = vst.msk [vmem:[#allocation3] sm:$0xff] %vm29_vm3, %v236_v4  ;;  %31 = vst.msk [vmem:[#allocation3 + $0x8] sm:$0xff] %vm29_vm3, %v236_v4  ;;  %v237_v20 = vmov 0  }
   0x3   :  { %207 = vmatprep.subr.bf16.mxu0 %v234_v0  ;;  %32 = vst.msk [vmem:[#allocation4] sm:$0xff] %vm29_vm3, %v234_v0  ;;  %33 = vst.msk [vmem:[#allocation4 + $0x8] sm:$0xff] %vm29_vm3, %v234_v0  ;;  %v201_v13 = vld [vmem:[%s309_s2] ss:$0 sm:$0xff]  ;;  %217 = vset.pattern.permute.xlu1 %v237_v20 }
   0x4   :  { %218 = vset.pattern.permute.xlu0 %v237_v20 }
   0x6   :  { %208 = vmatpush3.bf16.msra.mxu0 %v220_v2 }
   0x8   :  { %v34_v5 = vld [vmem:[#allocation2] sm:$0xff]  ;;  %v35_v7 = vld [vmem:[#allocation2 + $0x8] sm:$0xff] }
   0x9   :  { %210 = vmatmul.mubr.msk.bf16.vlgmr.msra.gmra.mrb[0].mxu0 %vm59_vm2, %v221_v3  ;;  %v125_v21 = vld [vmem:[#allocation3] sm:$0xff]  ;;  %v126_v24 = vld [vmem:[#allocation3 + $0x8] sm:$0xff] }
   0xa   :  { %v135_v42 = vld [vmem:[#allocation4] sm:$0xff]  ;;  %v136_v46 = vld [vmem:[#allocation4 + $0x8] sm:$0xff] }
  0xdc   :  { %v97_v6 = vpop.f32.mrb[0].mxu0 }
  0xdd   :  { %v104_v8 = vadd.f32 %v97_v6, %v34_v5  ;;  %v211_v9 = vpop.f32.mrb[1].mxu0 }
  0xde   :  { %v100_v10 = vpop.f32.mrb[2].mxu0 }
  0xdf   :  { %107 = vst.msk [vmem:[#allocation2] sm:$0xff] %vm21_vm0, %v104_v8  ;;  %v105_v11 = vadd.f32 %v100_v10, %v35_v7  ;;  %v212_v12 = vpop.f32.mrb[3].mxu0 }
  0xe1   :  { %108 = vst.msk [vmem:[#allocation2 + $0x8] sm:$0xff] %vm21_vm0, %v105_v11 }
  0xe6   :  { %v112_v14 = vld [vmem:[#allocation2] sm:$0xff] }
  0xe7   :  { %v121_v15 = vadd.f32 %v201_v13, %v112_v14 }
  0xe8   :  { %v113_v16 = vld [vmem:[#allocation2 + $0x8] sm:$0xff] }
  0xe9   :  { %v127_v17 = vsel %vm21_vm0, %v121_v15, -inf  ;;  %123 = vst.msk [vmem:[%s310_s3] sm:$0xff] %vm21_vm0, %v121_v15  ;;  %v122_v18 = vadd.f32 %v201_v13, %v113_v16 }
  0xea   :  { %128 = vmax.xlane.f32.xlu0 %v127_v17 }
  0xeb   :  { %124 = vst.msk [vmem:[%s310_s3 + $0x8] sm:$0xff] %vm21_vm0, %v122_v18  ;;  %v130_v19 = vsel %vm21_vm0, %v122_v18, -inf }
  0xee   :  { %131 = vmax.xlane.f32.xlu0 %v130_v19 }
 0x177   :  { %v129_v22 = vpop.xlane.xlu0 %128 }
 0x178   :  { %v133_v23 = vmax.f32 %v125_v21, %v129_v22 }
 0x17a   :  { %v137_v25 = vsub.f32 %v125_v21, %v133_v23  ;;  %172 = vst.msk [vmem:[#allocation3] sm:$0xff] %vm29_vm3, %v133_v23  ;;  %147 = vperm.xlu1 %217, %v133_v23  }
 0x17b   :  { %v132_v26 = vpop.xlane.xlu0 %131 }
 0x17c   :  { %v134_v27 = vmax.f32 %v126_v24, %v132_v26  ;;  %v139_v39 = vmul.f32 1.442695, %v137_v25 }
 0x17e   :  { %v138_v28 = vsub.f32 %v126_v24, %v134_v27  ;;  %173 = vst.msk [vmem:[#allocation3 + $0x8] sm:$0xff] %vm29_vm3, %v134_v27  ;;  %152 = vperm.xlu1 %217, %v134_v27  }
 0x180   :  { %v141_v40 = vmul.f32 1.442695, %v138_v28 }
 0x181   :  { %v176_v55 = vld [vmem:[#allocation3] sm:$0xff] }
 0x185   :  { %v177_v59 = vld [vmem:[#allocation3 + $0x8] sm:$0xff] }
 0x1f9   :  { %v148_v29 = vpop.permute.xlu1 %147 }
 0x1fa   :  { %v155_v30 = vsub.f32 %v121_v15, %v148_v29 }
 0x1fc   :  { %v157_v31 = vmul.f32 1.442695, %v155_v30 }
 0x1fd   :  { %v153_v32 = vpop.permute.xlu1 %152 }
 0x1fe   :  { %222 = vpow2.f32 %v157_v31  ;;  %v156_v33 = vsub.f32 %v122_v18, %v153_v32 }
 0x200   :  { %v159_v34 = vmul.f32 1.442695, %v156_v33 }
 0x202   :  { %224 = vpow2.f32 %v159_v34 }
 0x203   :  { %226 = vpow2.f32 %v139_v39 }
 0x204   :  { %228 = vpow2.f32 %v141_v40 }
 0x208   :  { %v223_v35 = vpop.eup %222 }
 0x209   :  { %v161_v36 = vsel %vm21_vm0, %v223_v35, 0.0 }
 0x20a   :  { %162 = vadd.xlane.f32.xlu0 %v161_v36 }
 0x20c   :  { %v225_v37 = vpop.eup %224 }
 0x20d   :  { %v164_v38 = vsel %vm21_vm0, %v225_v37, 0.0  ;;  %v227_v41 = vpop.eup %226 }
 0x20e   :  { %165 = vadd.xlane.f32.xlu1 %v164_v38  ;;  %v143_v43 = vmul.f32 %v227_v41, %v135_v42  ;;  %v229_v44 = vpop.eup %228 }
 0x20f   :  { %v144_v48 = vmul.f32 %v229_v44, %v136_v46 }
 0x297   :  { %v163_v45 = vpop.xlane.xlu0 %162 }
 0x298   :  { %v167_v47 = vadd.f32 %v163_v45, %v143_v43 }
 0x29a   :  { %170 = vst.msk [vmem:[#allocation4] sm:$0xff] %vm29_vm3, %v167_v47 }
 0x29b   :  { %v166_v49 = vpop.xlane.xlu1 %165 }
 0x29c   :  { %v168_v50 = vadd.f32 %v166_v49, %v144_v48 }
 0x29e   :  { %171 = vst.msk [vmem:[#allocation4 + $0x8] sm:$0xff] %vm29_vm3, %v168_v50 }
 0x2a1   :  { %v178_v51 = vld [vmem:[#allocation4] sm:$0xff] }
 0x2a2   :  { %230 = vlog2.f32 %v178_v51 }
 0x2a5   :  { %v179_v52 = vld [vmem:[#allocation4 + $0x8] sm:$0xff] }
 0x2a6   :  { %232 = vlog2.f32 %v179_v52 }
 0x2ac   :  { %v231_v53 = vpop.eup %230 }
 0x2ad   :  { %v181_v54 = vmul.f32 0.6931472, %v231_v53 }
 0x2af   :  { %v184_v56 = vadd.f32 %v181_v54, %v176_v55 }
 0x2b0   :  { %v233_v57 = vpop.eup %232 }
 0x2b1   :  { %187 = vst.msk [vmem:[%s311_s4] sm:$0xff] %vm29_vm3, %v184_v56  ;;  %v183_v58 = vmul.f32 0.6931472, %v233_v57 }
 0x2b3   :  { %v185_v60 = vadd.f32 %v183_v58, %v177_v59 }
 0x2b5   :  { %188 = vst.msk [vmem:[%s311_s4 + $0x8] sm:$0xff] %vm29_vm3, %v185_v60 }

</bundles_post_ra>
